<compile_context>
chip_gen: v6e
topology: v6e:2x2x1
jax: 0.10.0
libtpu: 0.0.40
codegen_flags: <defaults>
</compile_context>

<pallas_src>
import functools

import jax
import jax.numpy as jnp
from jax import lax
from jax.experimental import pallas as pl
from jax.experimental.pallas import tpu as pltpu


def _round_up(n, m):
    return ((n + m - 1) // m) * m


def _sigmoid(x):
    # One EUP transcendental (tanh) instead of exp + divide.
    return 0.5 * jnp.tanh(0.5 * x) + 0.5


def linker(fmap, lengths, *, permuting=True):
    """JAX/Pallas-side equivalent of Linker.forward.

    Returns (padded batch-first tensor, lengths) -- the stand-in for
    torch PackedSequence consumed by the length-masked LSTM kernel below.
    """
    # TODO(synk): PackedSequence (data / batch_sizes / sorted_indices) itself has no
    # JAX equivalent; padded tensor + lengths carries the same information.
    x = jnp.transpose(fmap, (0, 2, 1)) if permuting else fmap   # (N, L, C)
    return x, lengths


def make_lstm_kernel(t_blk, hp, emit_seq):
    """Kernel factory. One grid step == one (batch-block, time-block) tile."""

    def kernel(len_ref, gx_ref, whh_ref, *refs):
        # len_ref : (B_BLK, 1) int32    sequence lengths
        # gx_ref  : (T_BLK, B_BLK, 4Hp) precomputed x@W_ih^T + b (f32)
        # whh_ref : (Hp, 4Hp) bf16      W_hh^T, gate-slot padded
        # outputs : [seq (T_BLK,B_BLK,Hp)], hn (B_BLK,Hp)
        # scratch : h, c (B_BLK, Hp) f32
        if emit_seq:
            out_ref, hn_ref, h_sc, c_sc = refs
        else:
            hn_ref, h_sc, c_sc = refs

        tb = pl.program_id(1)            # time-block index ("arbitrary" axis)

        @pl.when(tb == 0)
        def _():
            h_sc[...] = jnp.zeros_like(h_sc)
            c_sc[...] = jnp.zeros_like(c_sc)

        lens = len_ref[...]              # (B_BLK, 1)
        whh = whh_ref[...]               # resident weights, loaded once per block

        def step(s, carry):
            h_prev = h_sc[...]
            c_prev = c_sc[...]
            gates = gx_ref[s] + jnp.dot(h_prev.astype(jnp.bfloat16), whh,
                                        preferred_element_type=jnp.float32)
            i_g = _sigmoid(gates[:, 0 * hp:1 * hp])
            f_g = _sigmoid(gates[:, 1 * hp:2 * hp])
            g_g = jnp.tanh(gates[:, 2 * hp:3 * hp])
            o_g = _sigmoid(gates[:, 3 * hp:4 * hp])
            c_new = f_g * c_prev + i_g * g_g
            h_new = o_g * jnp.tanh(c_new)

            mask = (tb * t_blk + s) < lens          # (B_BLK,1) -> broadcasts over Hp
            h_sc[...] = jnp.where(mask, h_new, h_prev)
            c_sc[...] = jnp.where(mask, c_new, c_prev)
            if emit_seq:
                # pad_packed_sequence pads with zeros past each length.
                out_ref[s] = jnp.where(mask, h_new, 0.0).astype(out_ref.dtype)
            return carry

        lax.fori_loop(0, t_blk, step, 0, unroll=True)

        @pl.when(tb == pl.num_programs(1) - 1)
        def _():
            hn_ref[...] = h_sc[...].astype(hn_ref.dtype)

    return kernel


def lstm_encoder_forward(x, lengths, w_ih, w_hh, b_ih, b_hh, *,
                         using_sequence=True, t_blk=8, b_blk=8):
    """x: (B, T, D) batch_first padded input; lengths: (B,) int32."""
    B, T, D = x.shape
    H = w_hh.shape[1]
    assert w_ih.shape == (4 * H, D) and w_hh.shape == (4 * H, H)

    Hp = _round_up(H, 128)     # lane-dense hidden / gate slots
    Bp = _round_up(B, b_blk)   # sublane-aligned batch
    Tp = _round_up(T, t_blk)

    f32 = jnp.float32
    # Padded, transposed weights; each gate occupies a lane-aligned Hp slot so the
    # in-kernel gate slices gates[:, k*Hp:(k+1)*Hp] are lane-aligned (no relayout).
    wih_t = jnp.zeros((D, 4 * Hp), f32)
    whh_t = jnp.zeros((Hp, 4 * Hp), f32)
    bias = jnp.zeros((4 * Hp,), f32)
    for k in range(4):
        wih_t = wih_t.at[:, k * Hp:k * Hp + H].set(
            w_ih[k * H:(k + 1) * H, :].T.astype(f32))
        whh_t = whh_t.at[:H, k * Hp:k * Hp + H].set(
            w_hh[k * H:(k + 1) * H, :].T.astype(f32))
        bias = bias.at[k * Hp:k * Hp + H].set(
            (b_ih[k * H:(k + 1) * H] + b_hh[k * H:(k + 1) * H]).astype(f32))

    # Pad batch/time once, go time-major while the feature dim is still narrow (D).
    x_p = jnp.zeros((Bp, Tp, D), f32).at[:B, :T].set(x.astype(f32))
    x_tm = jnp.transpose(x_p, (1, 0, 2))                               # (Tp, Bp, D)
    len_p = jnp.zeros((Bp, 1), jnp.int32).at[:B, 0].set(lengths.astype(jnp.int32))

    # Hoisted input projection: one large MXU-friendly matmul over all time steps
    # (bf16 inputs, f32 accumulation). The kernel only keeps the recurrent matmul.
    gx = jnp.dot(x_tm.reshape(Tp * Bp, D).astype(jnp.bfloat16),
                 wih_t.astype(jnp.bfloat16),
                 preferred_element_type=f32) + bias[None, :]
    gx = gx.reshape(Tp, Bp, 4 * Hp)
    whh_bf = whh_t.astype(jnp.bfloat16)

    nb, nt = Bp // b_blk, Tp // t_blk
    kernel = make_lstm_kernel(t_blk, Hp, using_sequence)

    in_specs = [
        pl.BlockSpec((b_blk, 1), lambda b, t: (b, 0)),                  # lengths
        pl.BlockSpec((t_blk, b_blk, 4 * Hp), lambda b, t: (t, b, 0)),   # gates_x block
        pl.BlockSpec((Hp, 4 * Hp), lambda b, t: (0, 0)),                # W_hh^T
    ]
    hn_spec = pl.BlockSpec((b_blk, Hp), lambda b, t: (b, 0))
    hn_shape = jax.ShapeDtypeStruct((Bp, Hp), f32)

    if using_sequence:
        out_shape = (jax.ShapeDtypeStruct((Tp, Bp, Hp), f32), hn_shape)
        out_specs = [pl.BlockSpec((t_blk, b_blk, Hp), lambda b, t: (t, b, 0)),
                     hn_spec]
    else:
        # Feature-only path: do not emit (and never write) the full sequence.
        out_shape = hn_shape
        out_specs = hn_spec

    result = pl.pallas_call(
        kernel,
        out_shape=out_shape,
        grid_spec=pltpu.PrefetchScalarGridSpec(
            num_scalar_prefetch=0,
            grid=(nb, nt),
            in_specs=in_specs,
            out_specs=out_specs,
            scratch_shapes=[pltpu.VMEM((b_blk, Hp), f32),   # h state
                            pltpu.VMEM((b_blk, Hp), f32)],  # c state
        ),
        compiler_params=pltpu.CompilerParams(
            # batch blocks are independent (megacore-shardable on v7x);
            # the time recurrence is strictly sequential.
            dimension_semantics=("parallel", "arbitrary"),
        ),
    )(len_p, gx, whh_bf)

    if using_sequence:
        seq, _ = result
        return jnp.transpose(seq, (1, 0, 2))[:B, :T, :H]   # (B, T, H)
    return result[:B, :H]                                  # (B, H) == torch.cat([*h_n], -1)


def lstm_reference(x, lengths, w_ih, w_hh, b_ih, b_hh):
    """Pure-JAX f32 reference (lax.scan) with identical packed-sequence masking."""
    B, T, D = x.shape
    H = w_hh.shape[1]
    x_tm = jnp.transpose(x, (1, 0, 2)).astype(jnp.float32)

    def step(carry, inp):
        h, c = carry
        x_t, t = inp
        gates = x_t @ w_ih.T + h @ w_hh.T + b_ih + b_hh
        i_g = jax.nn.sigmoid(gates[:, 0 * H:1 * H])
        f_g = jax.nn.sigmoid(gates[:, 1 * H:2 * H])
        g_g = jnp.tanh(gates[:, 2 * H:3 * H])
        o_g = jax.nn.sigmoid(gates[:, 3 * H:4 * H])
        c_new = f_g * c + i_g * g_g
        h_new = o_g * jnp.tanh(c_new)
        mask = (t < lengths)[:, None]
        h = jnp.where(mask, h_new, h)
        c = jnp.where(mask, c_new, c)
        out = jnp.where(mask, h_new, 0.0)
        return (h, c), out

    (h_fin, _), outs = lax.scan(
        step,
        (jnp.zeros((B, H), jnp.float32), jnp.zeros((B, H), jnp.float32)),
        (x_tm, jnp.arange(T, dtype=jnp.int32)),
    )
    return jnp.transpose(outs, (1, 0, 2)), h_fin


if __name__ == "__main__":
    B, T, D, H = 2, 8, 16, 32

    key = jax.random.PRNGKey(0)
    k_x, k_wih, k_whh, k_bih, k_bhh = jax.random.split(key, 5)

    # Linker input: feature map (N, C, L) = (B, D, T), to be permuted to (B, T, D).
    fmap = jax.random.normal(k_x, (B, D, T), dtype=jnp.float32)
    lengths = jnp.array([T, 5], dtype=jnp.int32)   # "packed sequence" lengths

    # PyTorch default LSTM init: U(-1/sqrt(H), 1/sqrt(H))
    bound = 1.0 / (H ** 0.5)
    w_ih = jax.random.uniform(k_wih, (4 * H, D), jnp.float32, -bound, bound)
    w_hh = jax.random.uniform(k_whh, (4 * H, H), jnp.float32, -bound, bound)
    b_ih = jax.random.uniform(k_bih, (4 * H,), jnp.float32, -bound, bound)
    b_hh = jax.random.uniform(k_bhh, (4 * H,), jnp.float32, -bound, bound)

    # Linker: permute (N, C, L) -> (N, L, C) + "pack" (padded tensor + lengths).
    x, lens = linker(fmap, lengths, permuting=True)

    fwd_seq = jax.jit(functools.partial(lstm_encoder_forward, using_sequence=True))
    fwd_last = jax.jit(functools.partial(lstm_encoder_forward, using_sequence=False))

    hiddens = jax.block_until_ready(fwd_seq(x, lens, w_ih, w_hh, b_ih, b_hh))
    feature = jax.block_until_ready(fwd_last(x, lens, w_ih, w_hh, b_ih, b_hh))

    ref_hiddens, ref_feature = lstm_reference(x, lens, w_ih, w_hh, b_ih, b_hh)

    assert hiddens.shape == (B, T, H)
    assert feature.shape == (B, H)
    # bf16 MXU inputs (f32 accumulation / f32 state) -> loosened tolerance.
    assert jnp.allclose(hiddens, ref_hiddens, atol=2e-2, rtol=2e-2)
    assert jnp.allclose(feature, ref_feature, atol=2e-2, rtol=2e-2)
    # Packed-sequence semantics: positions past each length are exactly zero.
    assert jnp.all(hiddens[1, 5:, :] == 0.0)

    print("KERNEL_OK")
</pallas_src>

<mosaic_0001>
module attributes {stable_mosaic.version = 11 : i64} {
  func.func @kernel(%arg0: i32, %arg1: i32, %arg2: memref<8x1xi32, #tpu.memory_space<vmem>>, %arg3: memref<8x8x512xf32, #tpu.memory_space<vmem>>, %arg4: memref<128x512xbf16, #tpu.memory_space<vmem>>, %arg5: memref<8x8x128xf32, #tpu.memory_space<vmem>>, %arg6: memref<8x128xf32, #tpu.memory_space<vmem>>, %arg7: memref<8x128xf32, #tpu.memory_space<vmem>>, %arg8: memref<8x128xf32, #tpu.memory_space<vmem>>) attributes {dimension_semantics = [#tpu.dimension_semantics<parallel>, #tpu.dimension_semantics<arbitrary>], iteration_bounds = array<i64: 1, 1>, scalar_prefetch = 0 : i64, scratch_operands = 2 : i64, tpu.core_type = #tpu.core_type<tc>, window_params = [{transform_indices = @transform_0, window_bounds = array<i64: 8, 1>}, {transform_indices = @transform_1, window_bounds = array<i64: 8, 8, 512>}, {pipeline_mode = #tpu.pipeline_mode<synchronous>, transform_indices = @transform_2, window_bounds = array<i64: 128, 512>}, {transform_indices = @transform_3, window_bounds = array<i64: 8, 8, 128>}, {transform_indices = @transform_4, window_bounds = array<i64: 8, 128>}]} {
    %c0_i32 = arith.constant 0 : i32
    %0 = arith.cmpi eq, %arg1, %c0_i32 : i32
    %1 = arith.extui %0 : i1 to i32
    %c0_i32_0 = arith.constant 0 : i32
    %2 = arith.cmpi ne, %1, %c0_i32_0 : i32
    scf.if %2 {
      %cst_198 = arith.constant 0.000000e+00 : f32
      %480 = vector.broadcast %cst_198 : f32 to vector<8x128xf32>
      %c0_199 = arith.constant 0 : index
      %c0_200 = arith.constant 0 : index
      %481 = vector.load %arg7[%c0_199, %c0_200] : memref<8x128xf32, #tpu.memory_space<vmem>>, vector<8x128xf32>
      tpu.vector_store %arg7[%c0_199, %c0_200], %480 {strides = array<i32>} : memref<8x128xf32, #tpu.memory_space<vmem>>, vector<8x128xf32>,
      %cst_201 = arith.constant 0.000000e+00 : f32
      %482 = vector.broadcast %cst_201 : f32 to vector<8x128xf32>
      %c0_202 = arith.constant 0 : index
      %c0_203 = arith.constant 0 : index
      %483 = vector.load %arg8[%c0_202, %c0_203] : memref<8x128xf32, #tpu.memory_space<vmem>>, vector<8x128xf32>
      tpu.vector_store %arg8[%c0_202, %c0_203], %482 {strides = array<i32>} : memref<8x128xf32, #tpu.memory_space<vmem>>, vector<8x128xf32>,
    } else {
    }
    %c0 = arith.constant 0 : index
    %c0_1 = arith.constant 0 : index
    %3 = vector.load %arg2[%c0, %c0_1] : memref<8x1xi32, #tpu.memory_space<vmem>>, vector<8x1xi32>
    %c0_2 = arith.constant 0 : index
    %c0_3 = arith.constant 0 : index
    %4 = vector.load %arg4[%c0_2, %c0_3] : memref<128x512xbf16, #tpu.memory_space<vmem>>, vector<128x512xbf16>
    %c0_i32_4 = arith.constant 0 : i32
    %c0_5 = arith.constant 0 : index
    %c0_6 = arith.constant 0 : index
    %5 = vector.load %arg7[%c0_5, %c0_6] : memref<8x128xf32, #tpu.memory_space<vmem>>, vector<8x128xf32>
    %c0_7 = arith.constant 0 : index
    %c0_8 = arith.constant 0 : index
    %6 = vector.load %arg8[%c0_7, %c0_8] : memref<8x128xf32, #tpu.memory_space<vmem>>, vector<8x128xf32>
    %7 = arith.index_cast %c0_i32_4 : i32 to index
    %c0_9 = arith.constant 0 : index
    %c0_10 = arith.constant 0 : index
    %8 = vector.load %arg3[%7, %c0_9, %c0_10] : memref<8x8x512xf32, #tpu.memory_space<vmem>>, vector<1x8x512xf32>
    %9 = vector.shape_cast %8 : vector<1x8x512xf32> to vector<8x512xf32>
    %10 = arith.truncf %5 : vector<8x128xf32> to vector<8x128xbf16>
    %cst = arith.constant dense<0.000000e+00> : vector<8x512xf32>
    %11 = tpu.matmul %10, %4, %cst {dimension_numbers = #tpu.dot_dimension_numbers<[1], [0], [0], [1], [0, 0, 1, 1], [], []>} : vector<8x128xbf16>, vector<128x512xbf16>, vector<8x512xf32> -> vector<8x512xf32>
    %12 = arith.addf %9, %11 : vector<8x512xf32>
    %13 = vector.extract_strided_slice %12 {offsets = [0, 0], sizes = [8, 128], strides = [1, 1]} : vector<8x512xf32> to vector<8x128xf32>
    %cst_11 = arith.constant 5.000000e-01 : f32
    %14 = vector.broadcast %cst_11 : f32 to vector<8x128xf32>
    %15 = arith.mulf %14, %13 : vector<8x128xf32>
    %16 = math.tanh %15 : vector<8x128xf32>
    %cst_12 = arith.constant 5.000000e-01 : f32
    %17 = vector.broadcast %cst_12 : f32 to vector<8x128xf32>
    %18 = arith.mulf %17, %16 : vector<8x128xf32>
    %cst_13 = arith.constant 5.000000e-01 : f32
    %19 = vector.broadcast %cst_13 : f32 to vector<8x128xf32>
    %20 = arith.addf %18, %19 : vector<8x128xf32>
    %21 = vector.extract_strided_slice %12 {offsets = [0, 128], sizes = [8, 128], strides = [1, 1]} : vector<8x512xf32> to vector<8x128xf32>
    %cst_14 = arith.constant 5.000000e-01 : f32
    %22 = vector.broadcast %cst_14 : f32 to vector<8x128xf32>
    %23 = arith.mulf %22, %21 : vector<8x128xf32>
    %24 = math.tanh %23 : vector<8x128xf32>
    %cst_15 = arith.constant 5.000000e-01 : f32
    %25 = vector.broadcast %cst_15 : f32 to vector<8x128xf32>
    %26 = arith.mulf %25, %24 : vector<8x128xf32>
    %cst_16 = arith.constant 5.000000e-01 : f32
    %27 = vector.broadcast %cst_16 : f32 to vector<8x128xf32>
    %28 = arith.addf %26, %27 : vector<8x128xf32>
    %29 = vector.extract_strided_slice %12 {offsets = [0, 256], sizes = [8, 128], strides = [1, 1]} : vector<8x512xf32> to vector<8x128xf32>
    %30 = math.tanh %29 : vector<8x128xf32>
    %31 = vector.extract_strided_slice %12 {offsets = [0, 384], sizes = [8, 128], strides = [1, 1]} : vector<8x512xf32> to vector<8x128xf32>
    %cst_17 = arith.constant 5.000000e-01 : f32
    %32 = vector.broadcast %cst_17 : f32 to vector<8x128xf32>
    %33 = arith.mulf %32, %31 : vector<8x128xf32>
    %34 = math.tanh %33 : vector<8x128xf32>
    %cst_18 = arith.constant 5.000000e-01 : f32
    %35 = vector.broadcast %cst_18 : f32 to vector<8x128xf32>
    %36 = arith.mulf %35, %34 : vector<8x128xf32>
    %cst_19 = arith.constant 5.000000e-01 : f32
    %37 = vector.broadcast %cst_19 : f32 to vector<8x128xf32>
    %38 = arith.addf %36, %37 : vector<8x128xf32>
    %39 = arith.mulf %28, %6 : vector<8x128xf32>
    %40 = arith.mulf %20, %30 : vector<8x128xf32>
    %41 = arith.addf %39, %40 : vector<8x128xf32>
    %42 = math.tanh %41 : vector<8x128xf32>
    %43 = arith.mulf %38, %42 : vector<8x128xf32>
    %c8_i32 = arith.constant 8 : i32
    %44 = arith.muli %arg1, %c8_i32 : i32
    %45 = arith.addi %44, %c0_i32_4 : i32
    %46 = vector.broadcast %45 : i32 to vector<8x1xi32>
    %47 = arith.cmpi slt, %46, %3 : vector<8x1xi32>
    %48 = vector.shape_cast %47 : vector<8x1xi1> to vector<8x1xi1>
    %49 = vector.broadcast %48 : vector<8x1xi1> to vector<8x128xi1>
    %50 = arith.select %49, %43, %5 : vector<8x128xi1>, vector<8x128xf32>
    %c0_20 = arith.constant 0 : index
    %c0_21 = arith.constant 0 : index
    %51 = vector.load %arg7[%c0_20, %c0_21] : memref<8x128xf32, #tpu.memory_space<vmem>>, vector<8x128xf32>
    tpu.vector_store %arg7[%c0_20, %c0_21], %50 {strides = array<i32>} : memref<8x128xf32, #tpu.memory_space<vmem>>, vector<8x128xf32>,
    %52 = vector.shape_cast %47 : vector<8x1xi1> to vector<8x1xi1>
    %53 = vector.broadcast %52 : vector<8x1xi1> to vector<8x128xi1>
    %54 = arith.select %53, %41, %6 : vector<8x128xi1>, vector<8x128xf32>
    %c0_22 = arith.constant 0 : index
    %c0_23 = arith.constant 0 : index
    %55 = vector.load %arg8[%c0_22, %c0_23] : memref<8x128xf32, #tpu.memory_space<vmem>>, vector<8x128xf32>
    tpu.vector_store %arg8[%c0_22, %c0_23], %54 {strides = array<i32>} : memref<8x128xf32, #tpu.memory_space<vmem>>, vector<8x128xf32>,
    %cst_24 = arith.constant 0.000000e+00 : f32
    %56 = vector.shape_cast %47 : vector<8x1xi1> to vector<8x1xi1>
    %57 = vector.broadcast %56 : vector<8x1xi1> to vector<8x128xi1>
    %58 = vector.broadcast %cst_24 : f32 to vector<8x128xf32>
    %59 = arith.select %57, %43, %58 : vector<8x128xi1>, vector<8x128xf32>
    %60 = arith.index_cast %c0_i32_4 : i32 to index
    %c0_25 = arith.constant 0 : index
    %c0_26 = arith.constant 0 : index
    %61 = vector.load %arg5[%60, %c0_25, %c0_26] : memref<8x8x128xf32, #tpu.memory_space<vmem>>, vector<1x8x128xf32>
    %62 = vector.shape_cast %61 : vector<1x8x128xf32> to vector<8x128xf32>
    %63 = vector.shape_cast %59 : vector<8x128xf32> to vector<1x8x128xf32>
    tpu.vector_store %arg5[%60, %c0_25, %c0_26], %63 {strides = array<i32>} : memref<8x8x128xf32, #tpu.memory_space<vmem>>, vector<1x8x128xf32>,
    %c1_i32 = arith.constant 1 : i32
    %c0_27 = arith.constant 0 : index
    %c0_28 = arith.constant 0 : index
    %64 = vector.load %arg7[%c0_27, %c0_28] : memref<8x128xf32, #tpu.memory_space<vmem>>, vector<8x128xf32>
    %c0_29 = arith.constant 0 : index
    %c0_30 = arith.constant 0 : index
    %65 = vector.load %arg8[%c0_29, %c0_30] : memref<8x128xf32, #tpu.memory_space<vmem>>, vector<8x128xf32>
    %66 = arith.index_cast %c1_i32 : i32 to index
    %c0_31 = arith.constant 0 : index
    %c0_32 = arith.constant 0 : index
    %67 = vector.load %arg3[%66, %c0_31, %c0_32] : memref<8x8x512xf32, #tpu.memory_space<vmem>>, vector<1x8x512xf32>
    %68 = vector.shape_cast %67 : vector<1x8x512xf32> to vector<8x512xf32>
    %69 = arith.truncf %64 : vector<8x128xf32> to vector<8x128xbf16>
    %cst_33 = arith.constant dense<0.000000e+00> : vector<8x512xf32>
    %70 = tpu.matmul %69, %4, %cst_33 {dimension_numbers = #tpu.dot_dimension_numbers<[1], [0], [0], [1], [0, 0, 1, 1], [], []>} : vector<8x128xbf16>, vector<128x512xbf16>, vector<8x512xf32> -> vector<8x512xf32>
    %71 = arith.addf %68, %70 : vector<8x512xf32>
    %72 = vector.extract_strided_slice %71 {offsets = [0, 0], sizes = [8, 128], strides = [1, 1]} : vector<8x512xf32> to vector<8x128xf32>
    %cst_34 = arith.constant 5.000000e-01 : f32
    %73 = vector.broadcast %cst_34 : f32 to vector<8x128xf32>
    %74 = arith.mulf %73, %72 : vector<8x128xf32>
    %75 = math.tanh %74 : vector<8x128xf32>
    %cst_35 = arith.constant 5.000000e-01 : f32
    %76 = vector.broadcast %cst_35 : f32 to vector<8x128xf32>
    %77 = arith.mulf %76, %75 : vector<8x128xf32>
    %cst_36 = arith.constant 5.000000e-01 : f32
    %78 = vector.broadcast %cst_36 : f32 to vector<8x128xf32>
    %79 = arith.addf %77, %78 : vector<8x128xf32>
    %80 = vector.extract_strided_slice %71 {offsets = [0, 128], sizes = [8, 128], strides = [1, 1]} : vector<8x512xf32> to vector<8x128xf32>
    %cst_37 = arith.constant 5.000000e-01 : f32
    %81 = vector.broadcast %cst_37 : f32 to vector<8x128xf32>
    %82 = arith.mulf %81, %80 : vector<8x128xf32>
    %83 = math.tanh %82 : vector<8x128xf32>
    %cst_38 = arith.constant 5.000000e-01 : f32
    %84 = vector.broadcast %cst_38 : f32 to vector<8x128xf32>
    %85 = arith.mulf %84, %83 : vector<8x128xf32>
    %cst_39 = arith.constant 5.000000e-01 : f32
    %86 = vector.broadcast %cst_39 : f32 to vector<8x128xf32>
    %87 = arith.addf %85, %86 : vector<8x128xf32>
    %88 = vector.extract_strided_slice %71 {offsets = [0, 256], sizes = [8, 128], strides = [1, 1]} : vector<8x512xf32> to vector<8x128xf32>
    %89 = math.tanh %88 : vector<8x128xf32>
    %90 = vector.extract_strided_slice %71 {offsets = [0, 384], sizes = [8, 128], strides = [1, 1]} : vector<8x512xf32> to vector<8x128xf32>
    %cst_40 = arith.constant 5.000000e-01 : f32
    %91 = vector.broadcast %cst_40 : f32 to vector<8x128xf32>
    %92 = arith.mulf %91, %90 : vector<8x128xf32>
    %93 = math.tanh %92 : vector<8x128xf32>
    %cst_41 = arith.constant 5.000000e-01 : f32
    %94 = vector.broadcast %cst_41 : f32 to vector<8x128xf32>
    %95 = arith.mulf %94, %93 : vector<8x128xf32>
    %cst_42 = arith.constant 5.000000e-01 : f32
    %96 = vector.broadcast %cst_42 : f32 to vector<8x128xf32>
    %97 = arith.addf %95, %96 : vector<8x128xf32>
    %98 = arith.mulf %87, %65 : vector<8x128xf32>
    %99 = arith.mulf %79, %89 : vector<8x128xf32>
    %100 = arith.addf %98, %99 : vector<8x128xf32>
    %101 = math.tanh %100 : vector<8x128xf32>
    %102 = arith.mulf %97, %101 : vector<8x128xf32>
    %c8_i32_43 = arith.constant 8 : i32
    %103 = arith.muli %arg1, %c8_i32_43 : i32
    %104 = arith.addi %103, %c1_i32 : i32
    %105 = vector.broadcast %104 : i32 to vector<8x1xi32>
    %106 = arith.cmpi slt, %105, %3 : vector<8x1xi32>
    %107 = vector.shape_cast %106 : vector<8x1xi1> to vector<8x1xi1>
    %108 = vector.broadcast %107 : vector<8x1xi1> to vector<8x128xi1>
    %109 = arith.select %108, %102, %64 : vector<8x128xi1>, vector<8x128xf32>
    %c0_44 = arith.constant 0 : index
    %c0_45 = arith.constant 0 : index
    %110 = vector.load %arg7[%c0_44, %c0_45] : memref<8x128xf32, #tpu.memory_space<vmem>>, vector<8x128xf32>
    tpu.vector_store %arg7[%c0_44, %c0_45], %109 {strides = array<i32>} : memref<8x128xf32, #tpu.memory_space<vmem>>, vector<8x128xf32>,
    %111 = vector.shape_cast %106 : vector<8x1xi1> to vector<8x1xi1>
    %112 = vector.broadcast %111 : vector<8x1xi1> to vector<8x128xi1>
    %113 = arith.select %112, %100, %65 : vector<8x128xi1>, vector<8x128xf32>
    %c0_46 = arith.constant 0 : index
    %c0_47 = arith.constant 0 : index
    %114 = vector.load %arg8[%c0_46, %c0_47] : memref<8x128xf32, #tpu.memory_space<vmem>>, vector<8x128xf32>
    tpu.vector_store %arg8[%c0_46, %c0_47], %113 {strides = array<i32>} : memref<8x128xf32, #tpu.memory_space<vmem>>, vector<8x128xf32>,
    %cst_48 = arith.constant 0.000000e+00 : f32
    %115 = vector.shape_cast %106 : vector<8x1xi1> to vector<8x1xi1>
    %116 = vector.broadcast %115 : vector<8x1xi1> to vector<8x128xi1>
    %117 = vector.broadcast %cst_48 : f32 to vector<8x128xf32>
    %118 = arith.select %116, %102, %117 : vector<8x128xi1>, vector<8x128xf32>
    %119 = arith.index_cast %c1_i32 : i32 to index
    %c0_49 = arith.constant 0 : index
    %c0_50 = arith.constant 0 : index
    %120 = vector.load %arg5[%119, %c0_49, %c0_50] : memref<8x8x128xf32, #tpu.memory_space<vmem>>, vector<1x8x128xf32>
    %121 = vector.shape_cast %120 : vector<1x8x128xf32> to vector<8x128xf32>
    %122 = vector.shape_cast %118 : vector<8x128xf32> to vector<1x8x128xf32>
    tpu.vector_store %arg5[%119, %c0_49, %c0_50], %122 {strides = array<i32>} : memref<8x8x128xf32, #tpu.memory_space<vmem>>, vector<1x8x128xf32>,
    %c2_i32 = arith.constant 2 : i32
    %c0_51 = arith.constant 0 : index
    %c0_52 = arith.constant 0 : index
    %123 = vector.load %arg7[%c0_51, %c0_52] : memref<8x128xf32, #tpu.memory_space<vmem>>, vector<8x128xf32>
    %c0_53 = arith.constant 0 : index
    %c0_54 = arith.constant 0 : index
    %124 = vector.load %arg8[%c0_53, %c0_54] : memref<8x128xf32, #tpu.memory_space<vmem>>, vector<8x128xf32>
    %125 = arith.index_cast %c2_i32 : i32 to index
    %c0_55 = arith.constant 0 : index
    %c0_56 = arith.constant 0 : index
    %126 = vector.load %arg3[%125, %c0_55, %c0_56] : memref<8x8x512xf32, #tpu.memory_space<vmem>>, vector<1x8x512xf32>
    %127 = vector.shape_cast %126 : vector<1x8x512xf32> to vector<8x512xf32>
    %128 = arith.truncf %123 : vector<8x128xf32> to vector<8x128xbf16>
    %cst_57 = arith.constant dense<0.000000e+00> : vector<8x512xf32>
    %129 = tpu.matmul %128, %4, %cst_57 {dimension_numbers = #tpu.dot_dimension_numbers<[1], [0], [0], [1], [0, 0, 1, 1], [], []>} : vector<8x128xbf16>, vector<128x512xbf16>, vector<8x512xf32> -> vector<8x512xf32>
    %130 = arith.addf %127, %129 : vector<8x512xf32>
    %131 = vector.extract_strided_slice %130 {offsets = [0, 0], sizes = [8, 128], strides = [1, 1]} : vector<8x512xf32> to vector<8x128xf32>
    %cst_58 = arith.constant 5.000000e-01 : f32
    %132 = vector.broadcast %cst_58 : f32 to vector<8x128xf32>
    %133 = arith.mulf %132, %131 : vector<8x128xf32>
    %134 = math.tanh %133 : vector<8x128xf32>
    %cst_59 = arith.constant 5.000000e-01 : f32
    %135 = vector.broadcast %cst_59 : f32 to vector<8x128xf32>
    %136 = arith.mulf %135, %134 : vector<8x128xf32>
    %cst_60 = arith.constant 5.000000e-01 : f32
    %137 = vector.broadcast %cst_60 : f32 to vector<8x128xf32>
    %138 = arith.addf %136, %137 : vector<8x128xf32>
    %139 = vector.extract_strided_slice %130 {offsets = [0, 128], sizes = [8, 128], strides = [1, 1]} : vector<8x512xf32> to vector<8x128xf32>
    %cst_61 = arith.constant 5.000000e-01 : f32
    %140 = vector.broadcast %cst_61 : f32 to vector<8x128xf32>
    %141 = arith.mulf %140, %139 : vector<8x128xf32>
    %142 = math.tanh %141 : vector<8x128xf32>
    %cst_62 = arith.constant 5.000000e-01 : f32
    %143 = vector.broadcast %cst_62 : f32 to vector<8x128xf32>
    %144 = arith.mulf %143, %142 : vector<8x128xf32>
    %cst_63 = arith.constant 5.000000e-01 : f32
    %145 = vector.broadcast %cst_63 : f32 to vector<8x128xf32>
    %146 = arith.addf %144, %145 : vector<8x128xf32>
    %147 = vector.extract_strided_slice %130 {offsets = [0, 256], sizes = [8, 128], strides = [1, 1]} : vector<8x512xf32> to vector<8x128xf32>
    %148 = math.tanh %147 : vector<8x128xf32>
    %149 = vector.extract_strided_slice %130 {offsets = [0, 384], sizes = [8, 128], strides = [1, 1]} : vector<8x512xf32> to vector<8x128xf32>
    %cst_64 = arith.constant 5.000000e-01 : f32
    %150 = vector.broadcast %cst_64 : f32 to vector<8x128xf32>
    %151 = arith.mulf %150, %149 : vector<8x128xf32>
    %152 = math.tanh %151 : vector<8x128xf32>
    %cst_65 = arith.constant 5.000000e-01 : f32
    %153 = vector.broadcast %cst_65 : f32 to vector<8x128xf32>
    %154 = arith.mulf %153, %152 : vector<8x128xf32>
    %cst_66 = arith.constant 5.000000e-01 : f32
    %155 = vector.broadcast %cst_66 : f32 to vector<8x128xf32>
    %156 = arith.addf %154, %155 : vector<8x128xf32>
    %157 = arith.mulf %146, %124 : vector<8x128xf32>
    %158 = arith.mulf %138, %148 : vector<8x128xf32>
    %159 = arith.addf %157, %158 : vector<8x128xf32>
    %160 = math.tanh %159 : vector<8x128xf32>
    %161 = arith.mulf %156, %160 : vector<8x128xf32>
    %c8_i32_67 = arith.constant 8 : i32
    %162 = arith.muli %arg1, %c8_i32_67 : i32
    %163 = arith.addi %162, %c2_i32 : i32
    %164 = vector.broadcast %163 : i32 to vector<8x1xi32>
    %165 = arith.cmpi slt, %164, %3 : vector<8x1xi32>
    %166 = vector.shape_cast %165 : vector<8x1xi1> to vector<8x1xi1>
    %167 = vector.broadcast %166 : vector<8x1xi1> to vector<8x128xi1>
    %168 = arith.select %167, %161, %123 : vector<8x128xi1>, vector<8x128xf32>
    %c0_68 = arith.constant 0 : index
    %c0_69 = arith.constant 0 : index
    %169 = vector.load %arg7[%c0_68, %c0_69] : memref<8x128xf32, #tpu.memory_space<vmem>>, vector<8x128xf32>
    tpu.vector_store %arg7[%c0_68, %c0_69], %168 {strides = array<i32>} : memref<8x128xf32, #tpu.memory_space<vmem>>, vector<8x128xf32>,
    %170 = vector.shape_cast %165 : vector<8x1xi1> to vector<8x1xi1>
    %171 = vector.broadcast %170 : vector<8x1xi1> to vector<8x128xi1>
    %172 = arith.select %171, %159, %124 : vector<8x128xi1>, vector<8x128xf32>
    %c0_70 = arith.constant 0 : index
    %c0_71 = arith.constant 0 : index
    %173 = vector.load %arg8[%c0_70, %c0_71] : memref<8x128xf32, #tpu.memory_space<vmem>>, vector<8x128xf32>
    tpu.vector_store %arg8[%c0_70, %c0_71], %172 {strides = array<i32>} : memref<8x128xf32, #tpu.memory_space<vmem>>, vector<8x128xf32>,
    %cst_72 = arith.constant 0.000000e+00 : f32
    %174 = vector.shape_cast %165 : vector<8x1xi1> to vector<8x1xi1>
    %175 = vector.broadcast %174 : vector<8x1xi1> to vector<8x128xi1>
    %176 = vector.broadcast %cst_72 : f32 to vector<8x128xf32>
    %177 = arith.select %175, %161, %176 : vector<8x128xi1>, vector<8x128xf32>
    %178 = arith.index_cast %c2_i32 : i32 to index
    %c0_73 = arith.constant 0 : index
    %c0_74 = arith.constant 0 : index
    %179 = vector.load %arg5[%178, %c0_73, %c0_74] : memref<8x8x128xf32, #tpu.memory_space<vmem>>, vector<1x8x128xf32>
    %180 = vector.shape_cast %179 : vector<1x8x128xf32> to vector<8x128xf32>
    %181 = vector.shape_cast %177 : vector<8x128xf32> to vector<1x8x128xf32>
    tpu.vector_store %arg5[%178, %c0_73, %c0_74], %181 {strides = array<i32>} : memref<8x8x128xf32, #tpu.memory_space<vmem>>, vector<1x8x128xf32>,
    %c3_i32 = arith.constant 3 : i32
    %c0_75 = arith.constant 0 : index
    %c0_76 = arith.constant 0 : index
    %182 = vector.load %arg7[%c0_75, %c0_76] : memref<8x128xf32, #tpu.memory_space<vmem>>, vector<8x128xf32>
    %c0_77 = arith.constant 0 : index
    %c0_78 = arith.constant 0 : index
    %183 = vector.load %arg8[%c0_77, %c0_78] : memref<8x128xf32, #tpu.memory_space<vmem>>, vector<8x128xf32>
    %184 = arith.index_cast %c3_i32 : i32 to index
    %c0_79 = arith.constant 0 : index
    %c0_80 = arith.constant 0 : index
    %185 = vector.load %arg3[%184, %c0_79, %c0_80] : memref<8x8x512xf32, #tpu.memory_space<vmem>>, vector<1x8x512xf32>
    %186 = vector.shape_cast %185 : vector<1x8x512xf32> to vector<8x512xf32>
    %187 = arith.truncf %182 : vector<8x128xf32> to vector<8x128xbf16>
    %cst_81 = arith.constant dense<0.000000e+00> : vector<8x512xf32>
    %188 = tpu.matmul %187, %4, %cst_81 {dimension_numbers = #tpu.dot_dimension_numbers<[1], [0], [0], [1], [0, 0, 1, 1], [], []>} : vector<8x128xbf16>, vector<128x512xbf16>, vector<8x512xf32> -> vector<8x512xf32>
    %189 = arith.addf %186, %188 : vector<8x512xf32>
    %190 = vector.extract_strided_slice %189 {offsets = [0, 0], sizes = [8, 128], strides = [1, 1]} : vector<8x512xf32> to vector<8x128xf32>
    %cst_82 = arith.constant 5.000000e-01 : f32
    %191 = vector.broadcast %cst_82 : f32 to vector<8x128xf32>
    %192 = arith.mulf %191, %190 : vector<8x128xf32>
    %193 = math.tanh %192 : vector<8x128xf32>
    %cst_83 = arith.constant 5.000000e-01 : f32
    %194 = vector.broadcast %cst_83 : f32 to vector<8x128xf32>
    %195 = arith.mulf %194, %193 : vector<8x128xf32>
    %cst_84 = arith.constant 5.000000e-01 : f32
    %196 = vector.broadcast %cst_84 : f32 to vector<8x128xf32>
    %197 = arith.addf %195, %196 : vector<8x128xf32>
    %198 = vector.extract_strided_slice %189 {offsets = [0, 128], sizes = [8, 128], strides = [1, 1]} : vector<8x512xf32> to vector<8x128xf32>
    %cst_85 = arith.constant 5.000000e-01 : f32
    %199 = vector.broadcast %cst_85 : f32 to vector<8x128xf32>
    %200 = arith.mulf %199, %198 : vector<8x128xf32>
    %201 = math.tanh %200 : vector<8x128xf32>
    %cst_86 = arith.constant 5.000000e-01 : f32
    %202 = vector.broadcast %cst_86 : f32 to vector<8x128xf32>
    %203 = arith.mulf %202, %201 : vector<8x128xf32>
    %cst_87 = arith.constant 5.000000e-01 : f32
    %204 = vector.broadcast %cst_87 : f32 to vector<8x128xf32>
    %205 = arith.addf %203, %204 : vector<8x128xf32>
    %206 = vector.extract_strided_slice %189 {offsets = [0, 256], sizes = [8, 128], strides = [1, 1]} : vector<8x512xf32> to vector<8x128xf32>
    %207 = math.tanh %206 : vector<8x128xf32>
    %208 = vector.extract_strided_slice %189 {offsets = [0, 384], sizes = [8, 128], strides = [1, 1]} : vector<8x512xf32> to vector<8x128xf32>
    %cst_88 = arith.constant 5.000000e-01 : f32
    %209 = vector.broadcast %cst_88 : f32 to vector<8x128xf32>
    %210 = arith.mulf %209, %208 : vector<8x128xf32>
    %211 = math.tanh %210 : vector<8x128xf32>
    %cst_89 = arith.constant 5.000000e-01 : f32
    %212 = vector.broadcast %cst_89 : f32 to vector<8x128xf32>
    %213 = arith.mulf %212, %211 : vector<8x128xf32>
    %cst_90 = arith.constant 5.000000e-01 : f32
    %214 = vector.broadcast %cst_90 : f32 to vector<8x128xf32>
    %215 = arith.addf %213, %214 : vector<8x128xf32>
    %216 = arith.mulf %205, %183 : vector<8x128xf32>
    %217 = arith.mulf %197, %207 : vector<8x128xf32>
    %218 = arith.addf %216, %217 : vector<8x128xf32>
    %219 = math.tanh %218 : vector<8x128xf32>
    %220 = arith.mulf %215, %219 : vector<8x128xf32>
    %c8_i32_91 = arith.constant 8 : i32
    %221 = arith.muli %arg1, %c8_i32_91 : i32
    %222 = arith.addi %221, %c3_i32 : i32
    %223 = vector.broadcast %222 : i32 to vector<8x1xi32>
    %224 = arith.cmpi slt, %223, %3 : vector<8x1xi32>
    %225 = vector.shape_cast %224 : vector<8x1xi1> to vector<8x1xi1>
    %226 = vector.broadcast %225 : vector<8x1xi1> to vector<8x128xi1>
    %227 = arith.select %226, %220, %182 : vector<8x128xi1>, vector<8x128xf32>
    %c0_92 = arith.constant 0 : index
    %c0_93 = arith.constant 0 : index
    %228 = vector.load %arg7[%c0_92, %c0_93] : memref<8x128xf32, #tpu.memory_space<vmem>>, vector<8x128xf32>
    tpu.vector_store %arg7[%c0_92, %c0_93], %227 {strides = array<i32>} : memref<8x128xf32, #tpu.memory_space<vmem>>, vector<8x128xf32>,
    %229 = vector.shape_cast %224 : vector<8x1xi1> to vector<8x1xi1>
    %230 = vector.broadcast %229 : vector<8x1xi1> to vector<8x128xi1>
    %231 = arith.select %230, %218, %183 : vector<8x128xi1>, vector<8x128xf32>
    %c0_94 = arith.constant 0 : index
    %c0_95 = arith.constant 0 : index
    %232 = vector.load %arg8[%c0_94, %c0_95] : memref<8x128xf32, #tpu.memory_space<vmem>>, vector<8x128xf32>
    tpu.vector_store %arg8[%c0_94, %c0_95], %231 {strides = array<i32>} : memref<8x128xf32, #tpu.memory_space<vmem>>, vector<8x128xf32>,
    %cst_96 = arith.constant 0.000000e+00 : f32
    %233 = vector.shape_cast %224 : vector<8x1xi1> to vector<8x1xi1>
    %234 = vector.broadcast %233 : vector<8x1xi1> to vector<8x128xi1>
    %235 = vector.broadcast %cst_96 : f32 to vector<8x128xf32>
    %236 = arith.select %234, %220, %235 : vector<8x128xi1>, vector<8x128xf32>
    %237 = arith.index_cast %c3_i32 : i32 to index
    %c0_97 = arith.constant 0 : index
    %c0_98 = arith.constant 0 : index
    %238 = vector.load %arg5[%237, %c0_97, %c0_98] : memref<8x8x128xf32, #tpu.memory_space<vmem>>, vector<1x8x128xf32>
    %239 = vector.shape_cast %238 : vector<1x8x128xf32> to vector<8x128xf32>
    %240 = vector.shape_cast %236 : vector<8x128xf32> to vector<1x8x128xf32>
    tpu.vector_store %arg5[%237, %c0_97, %c0_98], %240 {strides = array<i32>} : memref<8x8x128xf32, #tpu.memory_space<vmem>>, vector<1x8x128xf32>,
    %c4_i32 = arith.constant 4 : i32
    %c0_99 = arith.constant 0 : index
    %c0_100 = arith.constant 0 : index
    %241 = vector.load %arg7[%c0_99, %c0_100] : memref<8x128xf32, #tpu.memory_space<vmem>>, vector<8x128xf32>
    %c0_101 = arith.constant 0 : index
    %c0_102 = arith.constant 0 : index
    %242 = vector.load %arg8[%c0_101, %c0_102] : memref<8x128xf32, #tpu.memory_space<vmem>>, vector<8x128xf32>
    %243 = arith.index_cast %c4_i32 : i32 to index
    %c0_103 = arith.constant 0 : index
    %c0_104 = arith.constant 0 : index
    %244 = vector.load %arg3[%243, %c0_103, %c0_104] : memref<8x8x512xf32, #tpu.memory_space<vmem>>, vector<1x8x512xf32>
    %245 = vector.shape_cast %244 : vector<1x8x512xf32> to vector<8x512xf32>
    %246 = arith.truncf %241 : vector<8x128xf32> to vector<8x128xbf16>
    %cst_105 = arith.constant dense<0.000000e+00> : vector<8x512xf32>
    %247 = tpu.matmul %246, %4, %cst_105 {dimension_numbers = #tpu.dot_dimension_numbers<[1], [0], [0], [1], [0, 0, 1, 1], [], []>} : vector<8x128xbf16>, vector<128x512xbf16>, vector<8x512xf32> -> vector<8x512xf32>
    %248 = arith.addf %245, %247 : vector<8x512xf32>
    %249 = vector.extract_strided_slice %248 {offsets = [0, 0], sizes = [8, 128], strides = [1, 1]} : vector<8x512xf32> to vector<8x128xf32>
    %cst_106 = arith.constant 5.000000e-01 : f32
    %250 = vector.broadcast %cst_106 : f32 to vector<8x128xf32>
    %251 = arith.mulf %250, %249 : vector<8x128xf32>
    %252 = math.tanh %251 : vector<8x128xf32>
    %cst_107 = arith.constant 5.000000e-01 : f32
    %253 = vector.broadcast %cst_107 : f32 to vector<8x128xf32>
    %254 = arith.mulf %253, %252 : vector<8x128xf32>
    %cst_108 = arith.constant 5.000000e-01 : f32
    %255 = vector.broadcast %cst_108 : f32 to vector<8x128xf32>
    %256 = arith.addf %254, %255 : vector<8x128xf32>
    %257 = vector.extract_strided_slice %248 {offsets = [0, 128], sizes = [8, 128], strides = [1, 1]} : vector<8x512xf32> to vector<8x128xf32>
    %cst_109 = arith.constant 5.000000e-01 : f32
    %258 = vector.broadcast %cst_109 : f32 to vector<8x128xf32>
    %259 = arith.mulf %258, %257 : vector<8x128xf32>
    %260 = math.tanh %259 : vector<8x128xf32>
    %cst_110 = arith.constant 5.000000e-01 : f32
    %261 = vector.broadcast %cst_110 : f32 to vector<8x128xf32>
    %262 = arith.mulf %261, %260 : vector<8x128xf32>
    %cst_111 = arith.constant 5.000000e-01 : f32
    %263 = vector.broadcast %cst_111 : f32 to vector<8x128xf32>
    %264 = arith.addf %262, %263 : vector<8x128xf32>
    %265 = vector.extract_strided_slice %248 {offsets = [0, 256], sizes = [8, 128], strides = [1, 1]} : vector<8x512xf32> to vector<8x128xf32>
    %266 = math.tanh %265 : vector<8x128xf32>
    %267 = vector.extract_strided_slice %248 {offsets = [0, 384], sizes = [8, 128], strides = [1, 1]} : vector<8x512xf32> to vector<8x128xf32>
    %cst_112 = arith.constant 5.000000e-01 : f32
    %268 = vector.broadcast %cst_112 : f32 to vector<8x128xf32>
    %269 = arith.mulf %268, %267 : vector<8x128xf32>
    %270 = math.tanh %269 : vector<8x128xf32>
    %cst_113 = arith.constant 5.000000e-01 : f32
    %271 = vector.broadcast %cst_113 : f32 to vector<8x128xf32>
    %272 = arith.mulf %271, %270 : vector<8x128xf32>
    %cst_114 = arith.constant 5.000000e-01 : f32
    %273 = vector.broadcast %cst_114 : f32 to vector<8x128xf32>
    %274 = arith.addf %272, %273 : vector<8x128xf32>
    %275 = arith.mulf %264, %242 : vector<8x128xf32>
    %276 = arith.mulf %256, %266 : vector<8x128xf32>
    %277 = arith.addf %275, %276 : vector<8x128xf32>
    %278 = math.tanh %277 : vector<8x128xf32>
    %279 = arith.mulf %274, %278 : vector<8x128xf32>
    %c8_i32_115 = arith.constant 8 : i32
    %280 = arith.muli %arg1, %c8_i32_115 : i32
    %281 = arith.addi %280, %c4_i32 : i32
    %282 = vector.broadcast %281 : i32 to vector<8x1xi32>
    %283 = arith.cmpi slt, %282, %3 : vector<8x1xi32>
    %284 = vector.shape_cast %283 : vector<8x1xi1> to vector<8x1xi1>
    %285 = vector.broadcast %284 : vector<8x1xi1> to vector<8x128xi1>
    %286 = arith.select %285, %279, %241 : vector<8x128xi1>, vector<8x128xf32>
    %c0_116 = arith.constant 0 : index
    %c0_117 = arith.constant 0 : index
    %287 = vector.load %arg7[%c0_116, %c0_117] : memref<8x128xf32, #tpu.memory_space<vmem>>, vector<8x128xf32>
    tpu.vector_store %arg7[%c0_116, %c0_117], %286 {strides = array<i32>} : memref<8x128xf32, #tpu.memory_space<vmem>>, vector<8x128xf32>,
    %288 = vector.shape_cast %283 : vector<8x1xi1> to vector<8x1xi1>
    %289 = vector.broadcast %288 : vector<8x1xi1> to vector<8x128xi1>
    %290 = arith.select %289, %277, %242 : vector<8x128xi1>, vector<8x128xf32>
    %c0_118 = arith.constant 0 : index
    %c0_119 = arith.constant 0 : index
    %291 = vector.load %arg8[%c0_118, %c0_119] : memref<8x128xf32, #tpu.memory_space<vmem>>, vector<8x128xf32>
    tpu.vector_store %arg8[%c0_118, %c0_119], %290 {strides = array<i32>} : memref<8x128xf32, #tpu.memory_space<vmem>>, vector<8x128xf32>,
    %cst_120 = arith.constant 0.000000e+00 : f32
    %292 = vector.shape_cast %283 : vector<8x1xi1> to vector<8x1xi1>
    %293 = vector.broadcast %292 : vector<8x1xi1> to vector<8x128xi1>
    %294 = vector.broadcast %cst_120 : f32 to vector<8x128xf32>
    %295 = arith.select %293, %279, %294 : vector<8x128xi1>, vector<8x128xf32>
    %296 = arith.index_cast %c4_i32 : i32 to index
    %c0_121 = arith.constant 0 : index
    %c0_122 = arith.constant 0 : index
    %297 = vector.load %arg5[%296, %c0_121, %c0_122] : memref<8x8x128xf32, #tpu.memory_space<vmem>>, vector<1x8x128xf32>
    %298 = vector.shape_cast %297 : vector<1x8x128xf32> to vector<8x128xf32>
    %299 = vector.shape_cast %295 : vector<8x128xf32> to vector<1x8x128xf32>
    tpu.vector_store %arg5[%296, %c0_121, %c0_122], %299 {strides = array<i32>} : memref<8x8x128xf32, #tpu.memory_space<vmem>>, vector<1x8x128xf32>,
    %c5_i32 = arith.constant 5 : i32
    %c0_123 = arith.constant 0 : index
    %c0_124 = arith.constant 0 : index
    %300 = vector.load %arg7[%c0_123, %c0_124] : memref<8x128xf32, #tpu.memory_space<vmem>>, vector<8x128xf32>
    %c0_125 = arith.constant 0 : index
    %c0_126 = arith.constant 0 : index
    %301 = vector.load %arg8[%c0_125, %c0_126] : memref<8x128xf32, #tpu.memory_space<vmem>>, vector<8x128xf32>
    %302 = arith.index_cast %c5_i32 : i32 to index
    %c0_127 = arith.constant 0 : index
    %c0_128 = arith.constant 0 : index
    %303 = vector.load %arg3[%302, %c0_127, %c0_128] : memref<8x8x512xf32, #tpu.memory_space<vmem>>, vector<1x8x512xf32>
    %304 = vector.shape_cast %303 : vector<1x8x512xf32> to vector<8x512xf32>
    %305 = arith.truncf %300 : vector<8x128xf32> to vector<8x128xbf16>
    %cst_129 = arith.constant dense<0.000000e+00> : vector<8x512xf32>
    %306 = tpu.matmul %305, %4, %cst_129 {dimension_numbers = #tpu.dot_dimension_numbers<[1], [0], [0], [1], [0, 0, 1, 1], [], []>} : vector<8x128xbf16>, vector<128x512xbf16>, vector<8x512xf32> -> vector<8x512xf32>
    %307 = arith.addf %304, %306 : vector<8x512xf32>
    %308 = vector.extract_strided_slice %307 {offsets = [0, 0], sizes = [8, 128], strides = [1, 1]} : vector<8x512xf32> to vector<8x128xf32>
    %cst_130 = arith.constant 5.000000e-01 : f32
    %309 = vector.broadcast %cst_130 : f32 to vector<8x128xf32>
    %310 = arith.mulf %309, %308 : vector<8x128xf32>
    %311 = math.tanh %310 : vector<8x128xf32>
    %cst_131 = arith.constant 5.000000e-01 : f32
    %312 = vector.broadcast %cst_131 : f32 to vector<8x128xf32>
    %313 = arith.mulf %312, %311 : vector<8x128xf32>
    %cst_132 = arith.constant 5.000000e-01 : f32
    %314 = vector.broadcast %cst_132 : f32 to vector<8x128xf32>
    %315 = arith.addf %313, %314 : vector<8x128xf32>
    %316 = vector.extract_strided_slice %307 {offsets = [0, 128], sizes = [8, 128], strides = [1, 1]} : vector<8x512xf32> to vector<8x128xf32>
    %cst_133 = arith.constant 5.000000e-01 : f32
    %317 = vector.broadcast %cst_133 : f32 to vector<8x128xf32>
    %318 = arith.mulf %317, %316 : vector<8x128xf32>
    %319 = math.tanh %318 : vector<8x128xf32>
    %cst_134 = arith.constant 5.000000e-01 : f32
    %320 = vector.broadcast %cst_134 : f32 to vector<8x128xf32>
    %321 = arith.mulf %320, %319 : vector<8x128xf32>
    %cst_135 = arith.constant 5.000000e-01 : f32
    %322 = vector.broadcast %cst_135 : f32 to vector<8x128xf32>
    %323 = arith.addf %321, %322 : vector<8x128xf32>
    %324 = vector.extract_strided_slice %307 {offsets = [0, 256], sizes = [8, 128], strides = [1, 1]} : vector<8x512xf32> to vector<8x128xf32>
    %325 = math.tanh %324 : vector<8x128xf32>
    %326 = vector.extract_strided_slice %307 {offsets = [0, 384], sizes = [8, 128], strides = [1, 1]} : vector<8x512xf32> to vector<8x128xf32>
    %cst_136 = arith.constant 5.000000e-01 : f32
    %327 = vector.broadcast %cst_136 : f32 to vector<8x128xf32>
    %328 = arith.mulf %327, %326 : vector<8x128xf32>
    %329 = math.tanh %328 : vector<8x128xf32>
    %cst_137 = arith.constant 5.000000e-01 : f32
    %330 = vector.broadcast %cst_137 : f32 to vector<8x128xf32>
    %331 = arith.mulf %330, %329 : vector<8x128xf32>
    %cst_138 = arith.constant 5.000000e-01 : f32
    %332 = vector.broadcast %cst_138 : f32 to vector<8x128xf32>
    %333 = arith.addf %331, %332 : vector<8x128xf32>
    %334 = arith.mulf %323, %301 : vector<8x128xf32>
    %335 = arith.mulf %315, %325 : vector<8x128xf32>
    %336 = arith.addf %334, %335 : vector<8x128xf32>
    %337 = math.tanh %336 : vector<8x128xf32>
    %338 = arith.mulf %333, %337 : vector<8x128xf32>
    %c8_i32_139 = arith.constant 8 : i32
    %339 = arith.muli %arg1, %c8_i32_139 : i32
    %340 = arith.addi %339, %c5_i32 : i32
    %341 = vector.broadcast %340 : i32 to vector<8x1xi32>
    %342 = arith.cmpi slt, %341, %3 : vector<8x1xi32>
    %343 = vector.shape_cast %342 : vector<8x1xi1> to vector<8x1xi1>
    %344 = vector.broadcast %343 : vector<8x1xi1> to vector<8x128xi1>
    %345 = arith.select %344, %338, %300 : vector<8x128xi1>, vector<8x128xf32>
    %c0_140 = arith.constant 0 : index
    %c0_141 = arith.constant 0 : index
    %346 = vector.load %arg7[%c0_140, %c0_141] : memref<8x128xf32, #tpu.memory_space<vmem>>, vector<8x128xf32>
    tpu.vector_store %arg7[%c0_140, %c0_141], %345 {strides = array<i32>} : memref<8x128xf32, #tpu.memory_space<vmem>>, vector<8x128xf32>,
    %347 = vector.shape_cast %342 : vector<8x1xi1> to vector<8x1xi1>
    %348 = vector.broadcast %347 : vector<8x1xi1> to vector<8x128xi1>
    %349 = arith.select %348, %336, %301 : vector<8x128xi1>, vector<8x128xf32>
    %c0_142 = arith.constant 0 : index
    %c0_143 = arith.constant 0 : index
    %350 = vector.load %arg8[%c0_142, %c0_143] : memref<8x128xf32, #tpu.memory_space<vmem>>, vector<8x128xf32>
    tpu.vector_store %arg8[%c0_142, %c0_143], %349 {strides = array<i32>} : memref<8x128xf32, #tpu.memory_space<vmem>>, vector<8x128xf32>,
    %cst_144 = arith.constant 0.000000e+00 : f32
    %351 = vector.shape_cast %342 : vector<8x1xi1> to vector<8x1xi1>
    %352 = vector.broadcast %351 : vector<8x1xi1> to vector<8x128xi1>
    %353 = vector.broadcast %cst_144 : f32 to vector<8x128xf32>
    %354 = arith.select %352, %338, %353 : vector<8x128xi1>, vector<8x128xf32>
    %355 = arith.index_cast %c5_i32 : i32 to index
    %c0_145 = arith.constant 0 : index
    %c0_146 = arith.constant 0 : index
    %356 = vector.load %arg5[%355, %c0_145, %c0_146] : memref<8x8x128xf32, #tpu.memory_space<vmem>>, vector<1x8x128xf32>
    %357 = vector.shape_cast %356 : vector<1x8x128xf32> to vector<8x128xf32>
    %358 = vector.shape_cast %354 : vector<8x128xf32> to vector<1x8x128xf32>
    tpu.vector_store %arg5[%355, %c0_145, %c0_146], %358 {strides = array<i32>} : memref<8x8x128xf32, #tpu.memory_space<vmem>>, vector<1x8x128xf32>,
    %c6_i32 = arith.constant 6 : i32
    %c0_147 = arith.constant 0 : index
    %c0_148 = arith.constant 0 : index
    %359 = vector.load %arg7[%c0_147, %c0_148] : memref<8x128xf32, #tpu.memory_space<vmem>>, vector<8x128xf32>
    %c0_149 = arith.constant 0 : index
    %c0_150 = arith.constant 0 : index
    %360 = vector.load %arg8[%c0_149, %c0_150] : memref<8x128xf32, #tpu.memory_space<vmem>>, vector<8x128xf32>
    %361 = arith.index_cast %c6_i32 : i32 to index
    %c0_151 = arith.constant 0 : index
    %c0_152 = arith.constant 0 : index
    %362 = vector.load %arg3[%361, %c0_151, %c0_152] : memref<8x8x512xf32, #tpu.memory_space<vmem>>, vector<1x8x512xf32>
    %363 = vector.shape_cast %362 : vector<1x8x512xf32> to vector<8x512xf32>
    %364 = arith.truncf %359 : vector<8x128xf32> to vector<8x128xbf16>
    %cst_153 = arith.constant dense<0.000000e+00> : vector<8x512xf32>
    %365 = tpu.matmul %364, %4, %cst_153 {dimension_numbers = #tpu.dot_dimension_numbers<[1], [0], [0], [1], [0, 0, 1, 1], [], []>} : vector<8x128xbf16>, vector<128x512xbf16>, vector<8x512xf32> -> vector<8x512xf32>
    %366 = arith.addf %363, %365 : vector<8x512xf32>
    %367 = vector.extract_strided_slice %366 {offsets = [0, 0], sizes = [8, 128], strides = [1, 1]} : vector<8x512xf32> to vector<8x128xf32>
    %cst_154 = arith.constant 5.000000e-01 : f32
    %368 = vector.broadcast %cst_154 : f32 to vector<8x128xf32>
    %369 = arith.mulf %368, %367 : vector<8x128xf32>
    %370 = math.tanh %369 : vector<8x128xf32>
    %cst_155 = arith.constant 5.000000e-01 : f32
    %371 = vector.broadcast %cst_155 : f32 to vector<8x128xf32>
    %372 = arith.mulf %371, %370 : vector<8x128xf32>
    %cst_156 = arith.constant 5.000000e-01 : f32
    %373 = vector.broadcast %cst_156 : f32 to vector<8x128xf32>
    %374 = arith.addf %372, %373 : vector<8x128xf32>
    %375 = vector.extract_strided_slice %366 {offsets = [0, 128], sizes = [8, 128], strides = [1, 1]} : vector<8x512xf32> to vector<8x128xf32>
    %cst_157 = arith.constant 5.000000e-01 : f32
    %376 = vector.broadcast %cst_157 : f32 to vector<8x128xf32>
    %377 = arith.mulf %376, %375 : vector<8x128xf32>
    %378 = math.tanh %377 : vector<8x128xf32>
    %cst_158 = arith.constant 5.000000e-01 : f32
    %379 = vector.broadcast %cst_158 : f32 to vector<8x128xf32>
    %380 = arith.mulf %379, %378 : vector<8x128xf32>
    %cst_159 = arith.constant 5.000000e-01 : f32
    %381 = vector.broadcast %cst_159 : f32 to vector<8x128xf32>
    %382 = arith.addf %380, %381 : vector<8x128xf32>
    %383 = vector.extract_strided_slice %366 {offsets = [0, 256], sizes = [8, 128], strides = [1, 1]} : vector<8x512xf32> to vector<8x128xf32>
    %384 = math.tanh %383 : vector<8x128xf32>
    %385 = vector.extract_strided_slice %366 {offsets = [0, 384], sizes = [8, 128], strides = [1, 1]} : vector<8x512xf32> to vector<8x128xf32>
    %cst_160 = arith.constant 5.000000e-01 : f32
    %386 = vector.broadcast %cst_160 : f32 to vector<8x128xf32>
    %387 = arith.mulf %386, %385 : vector<8x128xf32>
    %388 = math.tanh %387 : vector<8x128xf32>
    %cst_161 = arith.constant 5.000000e-01 : f32
    %389 = vector.broadcast %cst_161 : f32 to vector<8x128xf32>
    %390 = arith.mulf %389, %388 : vector<8x128xf32>
    %cst_162 = arith.constant 5.000000e-01 : f32
    %391 = vector.broadcast %cst_162 : f32 to vector<8x128xf32>
    %392 = arith.addf %390, %391 : vector<8x128xf32>
    %393 = arith.mulf %382, %360 : vector<8x128xf32>
    %394 = arith.mulf %374, %384 : vector<8x128xf32>
    %395 = arith.addf %393, %394 : vector<8x128xf32>
    %396 = math.tanh %395 : vector<8x128xf32>
    %397 = arith.mulf %392, %396 : vector<8x128xf32>
    %c8_i32_163 = arith.constant 8 : i32
    %398 = arith.muli %arg1, %c8_i32_163 : i32
    %399 = arith.addi %398, %c6_i32 : i32
    %400 = vector.broadcast %399 : i32 to vector<8x1xi32>
    %401 = arith.cmpi slt, %400, %3 : vector<8x1xi32>
    %402 = vector.shape_cast %401 : vector<8x1xi1> to vector<8x1xi1>
    %403 = vector.broadcast %402 : vector<8x1xi1> to vector<8x128xi1>
    %404 = arith.select %403, %397, %359 : vector<8x128xi1>, vector<8x128xf32>
    %c0_164 = arith.constant 0 : index
    %c0_165 = arith.constant 0 : index
    %405 = vector.load %arg7[%c0_164, %c0_165] : memref<8x128xf32, #tpu.memory_space<vmem>>, vector<8x128xf32>
    tpu.vector_store %arg7[%c0_164, %c0_165], %404 {strides = array<i32>} : memref<8x128xf32, #tpu.memory_space<vmem>>, vector<8x128xf32>,
    %406 = vector.shape_cast %401 : vector<8x1xi1> to vector<8x1xi1>
    %407 = vector.broadcast %406 : vector<8x1xi1> to vector<8x128xi1>
    %408 = arith.select %407, %395, %360 : vector<8x128xi1>, vector<8x128xf32>
    %c0_166 = arith.constant 0 : index
    %c0_167 = arith.constant 0 : index
    %409 = vector.load %arg8[%c0_166, %c0_167] : memref<8x128xf32, #tpu.memory_space<vmem>>, vector<8x128xf32>
    tpu.vector_store %arg8[%c0_166, %c0_167], %408 {strides = array<i32>} : memref<8x128xf32, #tpu.memory_space<vmem>>, vector<8x128xf32>,
    %cst_168 = arith.constant 0.000000e+00 : f32
    %410 = vector.shape_cast %401 : vector<8x1xi1> to vector<8x1xi1>
    %411 = vector.broadcast %410 : vector<8x1xi1> to vector<8x128xi1>
    %412 = vector.broadcast %cst_168 : f32 to vector<8x128xf32>
    %413 = arith.select %411, %397, %412 : vector<8x128xi1>, vector<8x128xf32>
    %414 = arith.index_cast %c6_i32 : i32 to index
    %c0_169 = arith.constant 0 : index
    %c0_170 = arith.constant 0 : index
    %415 = vector.load %arg5[%414, %c0_169, %c0_170] : memref<8x8x128xf32, #tpu.memory_space<vmem>>, vector<1x8x128xf32>
    %416 = vector.shape_cast %415 : vector<1x8x128xf32> to vector<8x128xf32>
    %417 = vector.shape_cast %413 : vector<8x128xf32> to vector<1x8x128xf32>
    tpu.vector_store %arg5[%414, %c0_169, %c0_170], %417 {strides = array<i32>} : memref<8x8x128xf32, #tpu.memory_space<vmem>>, vector<1x8x128xf32>,
    %c7_i32 = arith.constant 7 : i32
    %c0_171 = arith.constant 0 : index
    %c0_172 = arith.constant 0 : index
    %418 = vector.load %arg7[%c0_171, %c0_172] : memref<8x128xf32, #tpu.memory_space<vmem>>, vector<8x128xf32>
    %c0_173 = arith.constant 0 : index
    %c0_174 = arith.constant 0 : index
    %419 = vector.load %arg8[%c0_173, %c0_174] : memref<8x128xf32, #tpu.memory_space<vmem>>, vector<8x128xf32>
    %420 = arith.index_cast %c7_i32 : i32 to index
    %c0_175 = arith.constant 0 : index
    %c0_176 = arith.constant 0 : index
    %421 = vector.load %arg3[%420, %c0_175, %c0_176] : memref<8x8x512xf32, #tpu.memory_space<vmem>>, vector<1x8x512xf32>
    %422 = vector.shape_cast %421 : vector<1x8x512xf32> to vector<8x512xf32>
    %423 = arith.truncf %418 : vector<8x128xf32> to vector<8x128xbf16>
    %cst_177 = arith.constant dense<0.000000e+00> : vector<8x512xf32>
    %424 = tpu.matmul %423, %4, %cst_177 {dimension_numbers = #tpu.dot_dimension_numbers<[1], [0], [0], [1], [0, 0, 1, 1], [], []>} : vector<8x128xbf16>, vector<128x512xbf16>, vector<8x512xf32> -> vector<8x512xf32>
    %425 = arith.addf %422, %424 : vector<8x512xf32>
    %426 = vector.extract_strided_slice %425 {offsets = [0, 0], sizes = [8, 128], strides = [1, 1]} : vector<8x512xf32> to vector<8x128xf32>
    %cst_178 = arith.constant 5.000000e-01 : f32
    %427 = vector.broadcast %cst_178 : f32 to vector<8x128xf32>
    %428 = arith.mulf %427, %426 : vector<8x128xf32>
    %429 = math.tanh %428 : vector<8x128xf32>
    %cst_179 = arith.constant 5.000000e-01 : f32
    %430 = vector.broadcast %cst_179 : f32 to vector<8x128xf32>
    %431 = arith.mulf %430, %429 : vector<8x128xf32>
    %cst_180 = arith.constant 5.000000e-01 : f32
    %432 = vector.broadcast %cst_180 : f32 to vector<8x128xf32>
    %433 = arith.addf %431, %432 : vector<8x128xf32>
    %434 = vector.extract_strided_slice %425 {offsets = [0, 128], sizes = [8, 128], strides = [1, 1]} : vector<8x512xf32> to vector<8x128xf32>
    %cst_181 = arith.constant 5.000000e-01 : f32
    %435 = vector.broadcast %cst_181 : f32 to vector<8x128xf32>
    %436 = arith.mulf %435, %434 : vector<8x128xf32>
    %437 = math.tanh %436 : vector<8x128xf32>
    %cst_182 = arith.constant 5.000000e-01 : f32
    %438 = vector.broadcast %cst_182 : f32 to vector<8x128xf32>
    %439 = arith.mulf %438, %437 : vector<8x128xf32>
    %cst_183 = arith.constant 5.000000e-01 : f32
    %440 = vector.broadcast %cst_183 : f32 to vector<8x128xf32>
    %441 = arith.addf %439, %440 : vector<8x128xf32>
    %442 = vector.extract_strided_slice %425 {offsets = [0, 256], sizes = [8, 128], strides = [1, 1]} : vector<8x512xf32> to vector<8x128xf32>
    %443 = math.tanh %442 : vector<8x128xf32>
    %444 = vector.extract_strided_slice %425 {offsets = [0, 384], sizes = [8, 128], strides = [1, 1]} : vector<8x512xf32> to vector<8x128xf32>
    %cst_184 = arith.constant 5.000000e-01 : f32
    %445 = vector.broadcast %cst_184 : f32 to vector<8x128xf32>
    %446 = arith.mulf %445, %444 : vector<8x128xf32>
    %447 = math.tanh %446 : vector<8x128xf32>
    %cst_185 = arith.constant 5.000000e-01 : f32
    %448 = vector.broadcast %cst_185 : f32 to vector<8x128xf32>
    %449 = arith.mulf %448, %447 : vector<8x128xf32>
    %cst_186 = arith.constant 5.000000e-01 : f32
    %450 = vector.broadcast %cst_186 : f32 to vector<8x128xf32>
    %451 = arith.addf %449, %450 : vector<8x128xf32>
    %452 = arith.mulf %441, %419 : vector<8x128xf32>
    %453 = arith.mulf %433, %443 : vector<8x128xf32>
    %454 = arith.addf %452, %453 : vector<8x128xf32>
    %455 = math.tanh %454 : vector<8x128xf32>
    %456 = arith.mulf %451, %455 : vector<8x128xf32>
    %c8_i32_187 = arith.constant 8 : i32
    %457 = arith.muli %arg1, %c8_i32_187 : i32
    %458 = arith.addi %457, %c7_i32 : i32
    %459 = vector.broadcast %458 : i32 to vector<8x1xi32>
    %460 = arith.cmpi slt, %459, %3 : vector<8x1xi32>
    %461 = vector.shape_cast %460 : vector<8x1xi1> to vector<8x1xi1>
    %462 = vector.broadcast %461 : vector<8x1xi1> to vector<8x128xi1>
    %463 = arith.select %462, %456, %418 : vector<8x128xi1>, vector<8x128xf32>
    %c0_188 = arith.constant 0 : index
    %c0_189 = arith.constant 0 : index
    %464 = vector.load %arg7[%c0_188, %c0_189] : memref<8x128xf32, #tpu.memory_space<vmem>>, vector<8x128xf32>
    tpu.vector_store %arg7[%c0_188, %c0_189], %463 {strides = array<i32>} : memref<8x128xf32, #tpu.memory_space<vmem>>, vector<8x128xf32>,
    %465 = vector.shape_cast %460 : vector<8x1xi1> to vector<8x1xi1>
    %466 = vector.broadcast %465 : vector<8x1xi1> to vector<8x128xi1>
    %467 = arith.select %466, %454, %419 : vector<8x128xi1>, vector<8x128xf32>
    %c0_190 = arith.constant 0 : index
    %c0_191 = arith.constant 0 : index
    %468 = vector.load %arg8[%c0_190, %c0_191] : memref<8x128xf32, #tpu.memory_space<vmem>>, vector<8x128xf32>
    tpu.vector_store %arg8[%c0_190, %c0_191], %467 {strides = array<i32>} : memref<8x128xf32, #tpu.memory_space<vmem>>, vector<8x128xf32>,
    %cst_192 = arith.constant 0.000000e+00 : f32
    %469 = vector.shape_cast %460 : vector<8x1xi1> to vector<8x1xi1>
    %470 = vector.broadcast %469 : vector<8x1xi1> to vector<8x128xi1>
    %471 = vector.broadcast %cst_192 : f32 to vector<8x128xf32>
    %472 = arith.select %470, %456, %471 : vector<8x128xi1>, vector<8x128xf32>
    %473 = arith.index_cast %c7_i32 : i32 to index
    %c0_193 = arith.constant 0 : index
    %c0_194 = arith.constant 0 : index
    %474 = vector.load %arg5[%473, %c0_193, %c0_194] : memref<8x8x128xf32, #tpu.memory_space<vmem>>, vector<1x8x128xf32>
    %475 = vector.shape_cast %474 : vector<1x8x128xf32> to vector<8x128xf32>
    %476 = vector.shape_cast %472 : vector<8x128xf32> to vector<1x8x128xf32>
    tpu.vector_store %arg5[%473, %c0_193, %c0_194], %476 {strides = array<i32>} : memref<8x8x128xf32, #tpu.memory_space<vmem>>, vector<1x8x128xf32>,
    %c8_i32_195 = arith.constant 8 : i32
    %c0_i32_196 = arith.constant 0 : i32
    %477 = arith.cmpi eq, %arg1, %c0_i32_196 : i32
    %478 = arith.extui %477 : i1 to i32
    %c0_i32_197 = arith.constant 0 : i32
    %479 = arith.cmpi ne, %478, %c0_i32_197 : i32
    scf.if %479 {
      %c0_198 = arith.constant 0 : index
      %c0_199 = arith.constant 0 : index
      %480 = vector.load %arg7[%c0_198, %c0_199] : memref<8x128xf32, #tpu.memory_space<vmem>>, vector<8x128xf32>
      %c0_200 = arith.constant 0 : index
      %c0_201 = arith.constant 0 : index
      %481 = vector.load %arg6[%c0_200, %c0_201] : memref<8x128xf32, #tpu.memory_space<vmem>>, vector<8x128xf32>
      tpu.vector_store %arg6[%c0_200, %c0_201], %480 {strides = array<i32>} : memref<8x128xf32, #tpu.memory_space<vmem>>, vector<8x128xf32>,
    } else {
    }
    return
  }
  func.func @transform_0(%arg0: i32, %arg1: i32) -> (i32, i32) {
    %c0_i32 = arith.constant 0 : i32
    %c0_i32_0 = arith.constant 0 : i32
    return %arg0, %c0_i32 : i32, i32
  }
  func.func @transform_1(%arg0: i32, %arg1: i32) -> (i32, i32, i32) {
    %c0_i32 = arith.constant 0 : i32
    %c0_i32_0 = arith.constant 0 : i32
    return %arg1, %arg0, %c0_i32 : i32, i32, i32
  }
  func.func @transform_2(%arg0: i32, %arg1: i32) -> (i32, i32) {
    %c0_i32 = arith.constant 0 : i32
    %c0_i32_0 = arith.constant 0 : i32
    %c0_i32_1 = arith.constant 0 : i32
    return %c0_i32, %c0_i32_0 : i32, i32
  }
  func.func @transform_3(%arg0: i32, %arg1: i32) -> (i32, i32, i32) {
    %c0_i32 = arith.constant 0 : i32
    %c0_i32_0 = arith.constant 0 : i32
    return %arg1, %arg0, %c0_i32 : i32, i32, i32
  }
  func.func @transform_4(%arg0: i32, %arg1: i32) -> (i32, i32) {
    %c0_i32 = arith.constant 0 : i32
    %c0_i32_0 = arith.constant 0 : i32
    return %arg0, %c0_i32 : i32, i32
  }
}

</mosaic_0001>

<bundles_post_ra>
// kernel: lstm_encoder_forward.1
= control target key start
LH: loop header
LB: loop body
LE: loop exit
PB: predicated region body
PF: predicated region fallthrough
CT: control target
= control target key end

     0   :  { %v1522_v2 = vmov 0   ;;  %s2288_s0 = inlined_call_operand.vmem [shape: s32[8,1], index: 0, kind: input, shape index: {}]   ;;  %s2289_s1 = inlined_call_operand.vmem [shape: f32[8,8,512], index: 1, kind: input, shape index: {}]   ;;  %s2290_s2 = inlined_call_operand.vmem [shape: bf16[128,512], index: 2, kind: input, shape index: {}]   ;;  %s2291_s3 = inlined_call_operand.vmem [shape: f32[8,8,128], index: 3, kind: output, shape index: {0}]   ;;  %s2292_s4 = inlined_call_operand.hbm [shape: f32[8,128], index: 4, kind: output, shape index: {1}]  }
   0x1   :  { %v1553_v0 = vld [vmem:[%s2290_s2 + $0xe4] ss:$16 sps:$4 sm:$0xff]   ;;  %v1558_v1 = vld [vmem:[%s2290_s2 + $0xe0] ss:$16 sps:$4 sm:$0xff]   ;;  %256 = vmatprep.mubr.bf16.mxu0 %v1522_v2  ;;  %297 = vmatprep.mubr.bf16.mxu1 %v1522_v2  ;;  %v1566_v3 = vld [vmem:[%s2290_s2 + $0xec] ss:$16 sps:$4 sm:$0xff]  }
   0x2   :  { %224 = vmatprep.subr.bf16.mxu0 %v1553_v0  ;;  %v1571_v4 = vld [vmem:[%s2290_s2 + $0xe8] ss:$16 sps:$4 sm:$0xff]   ;;  %1338 = vset.pattern.permute.xlu0 %v1522_v2  ;;  %v1578_v5 = vld [vmem:[%s2290_s2 + $0xc4] ss:$16 sps:$4 sm:$0xff]   ;;  %v1583_v6 = vld [vmem:[%s2290_s2 + $0xc0] ss:$16 sps:$4 sm:$0xff]  }
   0x3   :  { %225 = vmatpush1.bf16.msra.mxu0 %v1558_v1  ;;  %1339 = vset.pattern.permute.xlu1 %v1522_v2  ;;  %v1590_v7 = vld [vmem:[%s2290_s2 + $0xcc] ss:$16 sps:$4 sm:$0xff]   ;;  %v1597_v8 = vld [vmem:[%s2290_s2 + $0xc8] ss:$16 sps:$4 sm:$0xff]   ;;  %v1603_v9 = vld [vmem:[%s2290_s2 + $0xa4] ss:$16 sps:$4 sm:$0xff]  }
   0x4   :  { %265 = vmatprep.subr.bf16.mxu1 %v1566_v3  ;;  %226 = vmatprep.subr.bf16.mxu0 %v1578_v5  ;;  %v1609_v10 = vld [vmem:[%s2290_s2 + $0xa0] ss:$16 sps:$4 sm:$0xff]   ;;  %v1614_v11 = vld [vmem:[%s2290_s2 + $0xac] ss:$16 sps:$4 sm:$0xff]   ;;  %v1620_v12 = vld [vmem:[%s2290_s2 + $0x84] ss:$16 sps:$4 sm:$0xff]  }
   0x5   :  { %266 = vmatpush1.bf16.msra.mxu1 %v1571_v4  ;;  %v1626_v13 = vld [vmem:[%s2290_s2 + $0xa8] ss:$16 sps:$4 sm:$0xff]   ;;  %v1632_v14 = vld [vmem:[%s2290_s2 + $0x8c] ss:$16 sps:$4 sm:$0xff]   ;;  %v1638_v15 = vld [vmem:[%s2290_s2 + $0x80] ss:$16 sps:$4 sm:$0xff]  }
   0x6   :  { %267 = vmatprep.subr.bf16.mxu1 %v1590_v7  ;;  %v1644_v16 = vld [vmem:[%s2290_s2 + $0x64] ss:$16 sps:$4 sm:$0xff]   ;;  %v1650_v17 = vld [vmem:[%s2290_s2 + $0x88] ss:$16 sps:$4 sm:$0xff]   ;;  %v1656_v18 = vld [vmem:[%s2290_s2 + $0x6c] ss:$16 sps:$4 sm:$0xff]  }
   0x7   :  { %227 = vmatpush1.bf16.msra.mxu0 %v1583_v6  ;;  %v1662_v19 = vld [vmem:[%s2290_s2 + $0x60] ss:$16 sps:$4 sm:$0xff]   ;;  %v1668_v20 = vld [vmem:[%s2290_s2 + $0x44] ss:$16 sps:$4 sm:$0xff]   ;;  %v1674_v21 = vld [vmem:[%s2290_s2 + $0x68] ss:$16 sps:$4 sm:$0xff]  }
   0x8   :  { %228 = vmatprep.subr.bf16.mxu0 %v1603_v9  ;;  %v1680_v22 = vld [vmem:[%s2290_s2 + $0x4c] ss:$16 sps:$4 sm:$0xff]   ;;  %v1686_v23 = vld [vmem:[%s2290_s2 + $0x40] ss:$16 sps:$4 sm:$0xff]   ;;  %v1692_v24 = vld [vmem:[%s2290_s2 + $0x24] ss:$16 sps:$4 sm:$0xff]  }
   0x9   :  { %268 = vmatpush1.bf16.msra.mxu1 %v1597_v8  ;;  %v1698_v25 = vld [vmem:[%s2290_s2 + $0x48] ss:$16 sps:$4 sm:$0xff]   ;;  %v1703_v26 = vld [vmem:[%s2288_s0] sm:$0xff]  ;;  %v1709_v27 = vld [vmem:[%s2290_s2 + $0x2c] ss:$16 sps:$4 sm:$0xff]  }
   0xa   :  { %269 = vmatprep.subr.bf16.mxu1 %v1614_v11  ;;  %vm1286_vm0 = vcmp.gt.s32.totalorder %v1703_v26, 0  ;;  %vm1291_vm1 = vcmp.gt.s32.totalorder %v1703_v26, 1 }
   0xb   :  { %229 = vmatpush1.bf16.msra.mxu0 %v1609_v10 }
   0xc   :  { %230 = vmatprep.subr.bf16.mxu0 %v1620_v12 }
   0xd   :  { %270 = vmatpush1.bf16.msra.mxu1 %v1626_v13 }
   0xe   :  { %271 = vmatprep.subr.bf16.mxu1 %v1632_v14 }
   0xf   :  { %231 = vmatpush1.bf16.msra.mxu0 %v1638_v15 }
  0x10   :  { %232 = vmatprep.subr.bf16.mxu0 %v1644_v16 }
  0x11   :  { %272 = vmatpush1.bf16.msra.mxu1 %v1650_v17 }
  0x12   :  { %273 = vmatprep.subr.bf16.mxu1 %v1656_v18 }
  0x13   :  { %233 = vmatpush1.bf16.msra.mxu0 %v1662_v19 }
  0x14   :  { %234 = vmatprep.subr.bf16.mxu0 %v1668_v20 }
  0x15   :  { %274 = vmatpush1.bf16.msra.mxu1 %v1674_v21 }
  0x16   :  { %275 = vmatprep.subr.bf16.mxu1 %v1680_v22 }
  0x17   :  { %10 = vsyncpa [#allocation5], 0  ;;  %235 = vmatpush1.bf16.msra.mxu0 %v1686_v23  ;;  %v1717_v28 = vld [vmem:[%s2290_s2 + $0x20] ss:$16 sps:$4 sm:$0xff]   ;;  %v331_v29 = vsel %vm1286_vm0, 1, %v1522_v2  ;;  %v457_v32 = vsel %vm1291_vm1, 1, %v1522_v2 }
  0x18   :  { %236 = vmatprep.subr.bf16.mxu0 %v1692_v24  ;;  %v1724_v30 = vld [vmem:[%s2290_s2 + $0x4] ss:$16 sps:$4 sm:$0xff]   ;;  %333 = vperm.xlu0 %1338, %v331_v29   ;;  %v1730_v31 = vld [vmem:[%s2290_s2 + $0x28] ss:$16 sps:$4 sm:$0xff]   ;;  %v1737_v33 = vld [vmem:[%s2290_s2 + $0xc] ss:$16 sps:$4 sm:$0xff]  }
  0x19   :  { %276 = vmatpush1.bf16.msra.mxu1 %v1698_v25  ;;  %vm1309_vm2 = vcmp.gt.s32.totalorder %v1703_v26, 4  ;;  %v1744_v34 = vld [vmem:[%s2290_s2] ss:$16 sps:$4 sm:$0xff]   ;;  %v1751_v35 = vld [vmem:[%s2290_s2 + $0x8] ss:$16 sps:$4 sm:$0xff]   ;;  %vm1321_vm3 = vcmp.gt.s32.totalorder %v1703_v26, 6 }
  0x1a   :  { %277 = vmatprep.subr.bf16.mxu1 %v1709_v27  ;;  %v838_v36 = vsel %vm1309_vm2, 1, %v1522_v2  ;;  %v1092_v37 = vsel %vm1321_vm3, 1, %v1522_v2  ;;  %v1523_v38 = vmov 0.0|0.0   ;;  %v59_v39 = vld [vmem:[%s2289_s1] sm:$0xff]  ;;  %v60_v41 = vld [vmem:[%s2289_s1 + $0x8] sm:$0xff]  ;;  %v61_v44 = vld [vmem:[%s2289_s1 + $0x10] sm:$0xff] }
  0x1b   :  { %237 = vmatpush1.bf16.msra.mxu0 %v1717_v28  ;;  %v62_v55 = vld [vmem:[%s2289_s1 + $0x18] sm:$0xff]  ;;  %vm1297_vm6 = vcmp.gt.s32.totalorder %v1703_v26, 2  ;;  %vm1303_vm7 = vcmp.gt.s32.totalorder %v1703_v26, 3  ;;  %vm1315_vm8 = vcmp.gt.s32.totalorder %v1703_v26, 5  ;;  %vm1327_vm9 = vcmp.gt.s32.totalorder %v1703_v26, 7  ;;  %v1289_v26 = vld [vmem:[%s2289_s1 + $0x30] sm:$0xff] }
  0x1c   :  { %238 = vmatprep.subr.bf16.mxu0 %v1724_v30  ;;  %459 = vperm.xlu0 %1338, %v457_v32  }
  0x1d   :  { %278 = vmatpush1.bf16.msra.mxu1 %v1730_v31 }
  0x1e   :  { %279 = vmatprep.subr.bf16.mxu1 %v1737_v33 }
  0x1f   :  { %239 = vmatpush1.bf16.msra.mxu0 %v1744_v34 }
  0x20   :  { %840 = vperm.xlu0 %1338, %v838_v36   ;;  %350 = vmatprep.subr.bf16.mxu0 %v1553_v0 }
  0x21   :  { %280 = vmatpush1.bf16.msra.mxu1 %v1751_v35 }
  0x22   :  { %257 = vmatmul.mubr.bf16.vlgmr.msra.gmra.mxu0 %v1523_v38  ;;  %391 = vmatprep.subr.bf16.mxu1 %v1566_v3 }
  0x23   :  { %351 = vmatpush1.bf16.msra.mxu0 %v1558_v1  ;;  %382 = vmatprep.mubr.bf16.mxu0 %v1522_v2 }
  0x24   :  { %298 = vmatmul.mubr.bf16.vlgmr.msra.gmra.mxu1 %v1523_v38  ;;  %1094 = vperm.xlu0 %1338, %v1092_v37  }
  0x25   :  { %392 = vmatpush1.bf16.msra.mxu1 %v1571_v4  ;;  %352 = vmatprep.subr.bf16.mxu0 %v1578_v5 }
  0x26   :  { %393 = vmatprep.subr.bf16.mxu1 %v1590_v7  ;;  %423 = vmatprep.mubr.bf16.mxu1 %v1522_v2 }
  0x27   :  { %353 = vmatpush1.bf16.msra.mxu0 %v1583_v6 }
  0x28   :  { %354 = vmatprep.subr.bf16.mxu0 %v1603_v9 }
  0x29   :  { %394 = vmatpush1.bf16.msra.mxu1 %v1597_v8 }
  0x2a   :  { %395 = vmatprep.subr.bf16.mxu1 %v1614_v11 }
  0x2b   :  { %355 = vmatpush1.bf16.msra.mxu0 %v1609_v10 }
  0x2c   :  { %356 = vmatprep.subr.bf16.mxu0 %v1620_v12 }
  0x2d   :  { %396 = vmatpush1.bf16.msra.mxu1 %v1626_v13 }
  0x2e   :  { %397 = vmatprep.subr.bf16.mxu1 %v1632_v14 }
  0x2f   :  { %357 = vmatpush1.bf16.msra.mxu0 %v1638_v15 }
  0x30   :  { %358 = vmatprep.subr.bf16.mxu0 %v1644_v16 }
  0x31   :  { %398 = vmatpush1.bf16.msra.mxu1 %v1650_v17 }
  0x32   :  { %399 = vmatprep.subr.bf16.mxu1 %v1656_v18 }
  0x33   :  { %359 = vmatpush1.bf16.msra.mxu0 %v1662_v19 }
  0x34   :  { %360 = vmatprep.subr.bf16.mxu0 %v1668_v20 }
  0x35   :  { %400 = vmatpush1.bf16.msra.mxu1 %v1674_v21 }
  0x36   :  { %401 = vmatprep.subr.bf16.mxu1 %v1680_v22 }
  0x37   :  { %361 = vmatpush1.bf16.msra.mxu0 %v1686_v23 }
  0x38   :  { %362 = vmatprep.subr.bf16.mxu0 %v1692_v24 }
  0x39   :  { %402 = vmatpush1.bf16.msra.mxu1 %v1698_v25 }
  0x3a   :  { %403 = vmatprep.subr.bf16.mxu1 %v1709_v27 }
  0x3b   :  { %363 = vmatpush1.bf16.msra.mxu0 %v1717_v28 }
  0x3c   :  { %364 = vmatprep.subr.bf16.mxu0 %v1724_v30 }
  0x3d   :  { %404 = vmatpush1.bf16.msra.mxu1 %v1730_v31 }
  0x3e   :  { %405 = vmatprep.subr.bf16.mxu1 %v1737_v33 }
  0x3f   :  { %365 = vmatpush1.bf16.msra.mxu0 %v1744_v34 }
  0x40   :  { %477 = vmatprep.subr.bf16.mxu0 %v1553_v0 }
  0x41   :  { %406 = vmatpush1.bf16.msra.mxu1 %v1751_v35 }
  0x42   :  { %518 = vmatprep.subr.bf16.mxu1 %v1566_v3 }
  0xe2   :  { %v258_v40 = vpop.f32.mrf.mxu0 }
  0xe3   :  { %v306_v42 = vadd.f32 %v258_v40, %v59_v39  ;;  %v1810_v40 = vpop.permute.xlu0 %333 }
  0xe4   :  { %v260_v43 = vpop.f32.mrf.mxu0  ;;  %v299_v45 = vpop.f32.mrf.mxu1  ;;  %vm335_vm4 = vcmp.eq.s32.totalorder %v1810_v40, 1  ;;  %v1293_v40 = vld [vmem:[%s2289_s1 + $0x40] sm:$0xff] }
  0xe5   :  { %v310_v46 = vmul.f32 0.5, %v306_v42  ;;  %v307_v47 = vadd.f32 %v260_v43, %v60_v41  ;;  %v308_v51 = vadd.f32 %v299_v45, %v61_v44  ;;  %vm1329_vm5 = vmpackc.low %vm335_vm4, %vm335_vm4 }
  0xe6   :  { %v262_v48 = vpop.f32.mrf.mxu0  ;;  %v301_v49 = vpop.f32.mrf.mxu1 }
  0xe7   :  { %1388 = vtanh.f32 %v310_v46  ;;  %v314_v50 = vmul.f32 0.5, %v307_v47  ;;  %v309_v56 = vadd.f32 %v301_v49, %v62_v55  ;;  %v584_v46 = vsel %vm1297_vm6, 1, %v1522_v2 }
  0xe8   :  { %v263_v52 = vpop.f32.mrf.mxu0  ;;  %v303_v53 = vpop.f32.mrf.mxu1  ;;  %586 = vperm.xlu1 %1339, %v584_v46   ;;  %v711_v47 = vsel %vm1303_vm7, 1, %v1522_v2  ;;  %v965_v48 = vsel %vm1315_vm8, 1, %v1522_v2  ;;  %v1219_v49 = vsel %vm1327_vm9, 1, %v1522_v2 }
  0xe9   :  { %1390 = vtanh.f32 %v314_v50  ;;  %v319_v57 = vmul.f32 0.5, %v309_v56  ;;  %v1287_v50 = vld [vmem:[%s2289_s1 + $0x20] sm:$0xff]  ;;  %v1288_v53 = vld [vmem:[%s2289_s1 + $0x28] sm:$0xff] }
  0xea   :  { %v304_v54 = vpop.f32.mrf.mxu1  ;;  %1392 = vtanh.f32 %v308_v51 }
  0xeb   :  { %1394 = vtanh.f32 %v319_v57 }
  0xec   :  { %713 = vperm.xlu1 %1339, %v711_v47  }
  0xf0   :  { %967 = vperm.xlu1 %1339, %v965_v48  }
  0xf4   :  { %v1389_v58 = vpop.eup %1388  ;;  %1221 = vperm.xlu1 %1339, %v1219_v49  }
  0xf5   :  { %v312_v59 = vmul.f32 0.5, %v1389_v58 }
  0xf6   :  { %v1391_v60 = vpop.eup %1390 }
  0xf7   :  { %v313_v61 = vadd.f32 0.5, %v312_v59  ;;  %v316_v62 = vmul.f32 0.5, %v1391_v60  ;;  %v1393_v63 = vpop.eup %1392 }
  0xf8   :  { %v1395_v38 = vpop.eup %1394 }
  0xf9   :  { %v317_v29 = vadd.f32 0.5, %v316_v62  ;;  %v324_v36 = vmul.f32 %v1393_v63, %v313_v61  ;;  %v321_v39 = vmul.f32 0.5, %v1395_v38 }
  0xfb   :  { %v323_v32 = vmul.f32 0.0, %v317_v29  ;;  %v322_v41 = vadd.f32 0.5, %v321_v39 }
  0xfd   :  { %v1807_v37 = vadd.f32 %v324_v36, %v323_v32  ;;  %v1290_v32 = vld [vmem:[%s2289_s1 + $0x38] sm:$0xff] }
  0xff   :  { %1396 = vtanh.f32 %v1807_v37  ;;  %v338_v48 = vsel %vm335_vm4, %v1807_v37, 0.0 }
 0x10c   :  { %v1397_v42 = vpop.eup %1396 }
 0x10d   :  { %v327_v43 = vmul.f32 %v1397_v42, %v322_v41 }
 0x10f   :  { %v1330_v44 = vpack.c.bf16 %v327_v43, %v327_v43  ;;  %v1818_v45 = vsel %vm335_vm4, %v327_v43, 0.0 }
 0x110   :  { %341 = vst [vmem:[%s2291_s3] sm:$0xff] %v1818_v45 }
 0x111   :  { %1331 = vmatmul.mubr.msk.bf16.vlgmr.msra.gmra.mxu0 %vm1329_vm5, %v1330_v44  ;;  %1334 = vmatmul.mubr.msk.bf16.vlgmr.msra.gmra.mxu1 %vm1329_vm5, %v1330_v44 }
 0x112   :  { %478 = vmatpush1.bf16.msra.mxu0 %v1558_v1  ;;  %519 = vmatpush1.bf16.msra.mxu1 %v1571_v4 }
 0x113   :  { %479 = vmatprep.subr.bf16.mxu0 %v1578_v5  ;;  %520 = vmatprep.subr.bf16.mxu1 %v1590_v7 }
 0x114   :  { %509 = vmatprep.mubr.bf16.mxu0 %v1522_v2  ;;  %550 = vmatprep.mubr.bf16.mxu1 %v1522_v2 }
 0x116   :  { %480 = vmatpush1.bf16.msra.mxu0 %v1583_v6  ;;  %521 = vmatpush1.bf16.msra.mxu1 %v1597_v8 }
 0x117   :  { %481 = vmatprep.subr.bf16.mxu0 %v1603_v9  ;;  %522 = vmatprep.subr.bf16.mxu1 %v1614_v11 }
 0x11a   :  { %482 = vmatpush1.bf16.msra.mxu0 %v1609_v10  ;;  %523 = vmatpush1.bf16.msra.mxu1 %v1626_v13 }
 0x11b   :  { %483 = vmatprep.subr.bf16.mxu0 %v1620_v12  ;;  %524 = vmatprep.subr.bf16.mxu1 %v1632_v14 }
 0x11e   :  { %484 = vmatpush1.bf16.msra.mxu0 %v1638_v15  ;;  %525 = vmatpush1.bf16.msra.mxu1 %v1650_v17 }
 0x11f   :  { %485 = vmatprep.subr.bf16.mxu0 %v1644_v16  ;;  %526 = vmatprep.subr.bf16.mxu1 %v1656_v18 }
 0x122   :  { %486 = vmatpush1.bf16.msra.mxu0 %v1662_v19  ;;  %527 = vmatpush1.bf16.msra.mxu1 %v1674_v21 }
 0x123   :  { %487 = vmatprep.subr.bf16.mxu0 %v1668_v20  ;;  %528 = vmatprep.subr.bf16.mxu1 %v1680_v22 }
 0x126   :  { %488 = vmatpush1.bf16.msra.mxu0 %v1686_v23  ;;  %529 = vmatpush1.bf16.msra.mxu1 %v1698_v25 }
 0x127   :  { %489 = vmatprep.subr.bf16.mxu0 %v1692_v24  ;;  %530 = vmatprep.subr.bf16.mxu1 %v1709_v27 }
 0x12a   :  { %490 = vmatpush1.bf16.msra.mxu0 %v1717_v28  ;;  %531 = vmatpush1.bf16.msra.mxu1 %v1730_v31 }
 0x12b   :  { %491 = vmatprep.subr.bf16.mxu0 %v1724_v30  ;;  %532 = vmatprep.subr.bf16.mxu1 %v1737_v33 }
 0x12e   :  { %492 = vmatpush1.bf16.msra.mxu0 %v1744_v34  ;;  %533 = vmatpush1.bf16.msra.mxu1 %v1751_v35 }
 0x12f   :  { %604 = vmatprep.subr.bf16.mxu0 %v1553_v0  ;;  %645 = vmatprep.subr.bf16.mxu1 %v1566_v3 }
 0x1d1   :  { %v384_v51 = vpop.f32.mrf.mxu0  ;;  %v425_v52 = vpop.f32.mrf.mxu1 }
 0x1d2   :  { %v432_v54 = vadd.f32 %v1287_v50, %v384_v51  ;;  %v434_v29 = vadd.f32 %v1289_v26, %v425_v52  ;;  %v460_v51 = vpop.permute.xlu0 %459 }
 0x1d3   :  { %v386_v55 = vpop.f32.mrf.mxu0  ;;  %v427_v56 = vpop.f32.mrf.mxu1  ;;  %vm461_vm10 = vcmp.eq.s32.totalorder %v460_v51, 1 }
 0x1d4   :  { %v436_v57 = vmul.f32 0.5, %v432_v54  ;;  %v433_v58 = vadd.f32 %v1288_v53, %v386_v55  ;;  %v435_v36 = vadd.f32 %v1290_v32, %v427_v56 }
 0x1d5   :  { %v388_v59 = vpop.f32.mrf.mxu0  ;;  %v429_v60 = vpop.f32.mrf.mxu1 }
 0x1d6   :  { %1398 = vtanh.f32 %v436_v57  ;;  %v440_v61 = vmul.f32 0.5, %v433_v58  ;;  %v445_v38 = vmul.f32 0.5, %v435_v36 }
 0x1d7   :  { %v389_v62 = vpop.f32.mrf.mxu0  ;;  %v430_v63 = vpop.f32.mrf.mxu1 }
 0x1d8   :  { %1400 = vtanh.f32 %v440_v61  ;;  %v1294_v61 = vld [vmem:[%s2289_s1 + $0x48] sm:$0xff] }
 0x1d9   :  { %1402 = vtanh.f32 %v434_v29 }
 0x1da   :  { %1404 = vtanh.f32 %v445_v38  ;;  %v1295_v38 = vld [vmem:[%s2289_s1 + $0x50] sm:$0xff] }
 0x1e3   :  { %v1399_v39 = vpop.eup %1398 }
 0x1e4   :  { %v438_v41 = vmul.f32 0.5, %v1399_v39 }
 0x1e5   :  { %v1401_v42 = vpop.eup %1400 }
 0x1e6   :  { %v439_v43 = vadd.f32 0.5, %v438_v41  ;;  %v442_v44 = vmul.f32 0.5, %v1401_v42  ;;  %v1403_v47 = vpop.eup %1402 }
 0x1e7   :  { %v1405_v54 = vpop.eup %1404 }
 0x1e8   :  { %v443_v46 = vadd.f32 0.5, %v442_v44  ;;  %v450_v50 = vmul.f32 %v1403_v47, %v439_v43  ;;  %v447_v55 = vmul.f32 0.5, %v1405_v54  ;;  %v1296_v47 = vld [vmem:[%s2289_s1 + $0x58] sm:$0xff] }
 0x1ea   :  { %v449_v49 = vmul.f32 %v443_v46, %v338_v48  ;;  %v448_v56 = vadd.f32 0.5, %v447_v55 }
 0x1ec   :  { %v451_v52 = vadd.f32 %v450_v50, %v449_v49 }
 0x1ee   :  { %1406 = vtanh.f32 %v451_v52  ;;  %v1881_v53 = vsel %vm461_vm10, %v451_v52, %v338_v48 }
 0x1fb   :  { %v1407_v57 = vpop.eup %1406 }
 0x1fc   :  { %v453_v58 = vmul.f32 %v1407_v57, %v448_v56  ;;  %v587_v57 = vpop.permute.xlu1 %586 }
 0x1fd   :  { %vm588_vm11 = vcmp.eq.s32.totalorder %v587_v57, 1 }
 0x1fe   :  { %v466_v26 = vsel %vm461_vm10, %v453_v58, 0.0  ;;  %v1884_v59 = vsel %vm461_vm10, %v453_v58, %v1818_v45 }
 0x1ff   :  { %1292 = vst [vmem:[%s2291_s3 + $0x8] sm:$0xff] %v466_v26  ;;  %v476_v37 = vpack.c.bf16 %v1884_v59, %v1884_v59 }
 0x201   :  { %510 = vmatmul.mubr.bf16.vlgmr.msra.gmra.mxu0 %v476_v37  ;;  %551 = vmatmul.mubr.bf16.vlgmr.msra.gmra.mxu1 %v476_v37 }
 0x202   :  { %605 = vmatpush1.bf16.msra.mxu0 %v1558_v1  ;;  %646 = vmatpush1.bf16.msra.mxu1 %v1571_v4 }
 0x203   :  { %606 = vmatprep.subr.bf16.mxu0 %v1578_v5  ;;  %647 = vmatprep.subr.bf16.mxu1 %v1590_v7 }
 0x204   :  { %636 = vmatprep.mubr.bf16.mxu0 %v1522_v2  ;;  %677 = vmatprep.mubr.bf16.mxu1 %v1522_v2 }
 0x206   :  { %607 = vmatpush1.bf16.msra.mxu0 %v1583_v6  ;;  %648 = vmatpush1.bf16.msra.mxu1 %v1597_v8 }
 0x207   :  { %608 = vmatprep.subr.bf16.mxu0 %v1603_v9  ;;  %649 = vmatprep.subr.bf16.mxu1 %v1614_v11 }
 0x20a   :  { %609 = vmatpush1.bf16.msra.mxu0 %v1609_v10  ;;  %650 = vmatpush1.bf16.msra.mxu1 %v1626_v13 }
 0x20b   :  { %610 = vmatprep.subr.bf16.mxu0 %v1620_v12  ;;  %651 = vmatprep.subr.bf16.mxu1 %v1632_v14 }
 0x20e   :  { %611 = vmatpush1.bf16.msra.mxu0 %v1638_v15  ;;  %652 = vmatpush1.bf16.msra.mxu1 %v1650_v17 }
 0x20f   :  { %612 = vmatprep.subr.bf16.mxu0 %v1644_v16  ;;  %653 = vmatprep.subr.bf16.mxu1 %v1656_v18 }
 0x212   :  { %613 = vmatpush1.bf16.msra.mxu0 %v1662_v19  ;;  %654 = vmatpush1.bf16.msra.mxu1 %v1674_v21 }
 0x213   :  { %614 = vmatprep.subr.bf16.mxu0 %v1668_v20  ;;  %655 = vmatprep.subr.bf16.mxu1 %v1680_v22 }
 0x216   :  { %615 = vmatpush1.bf16.msra.mxu0 %v1686_v23  ;;  %656 = vmatpush1.bf16.msra.mxu1 %v1698_v25 }
 0x217   :  { %616 = vmatprep.subr.bf16.mxu0 %v1692_v24  ;;  %657 = vmatprep.subr.bf16.mxu1 %v1709_v27 }
 0x21a   :  { %617 = vmatpush1.bf16.msra.mxu0 %v1717_v28  ;;  %658 = vmatpush1.bf16.msra.mxu1 %v1730_v31 }
 0x21b   :  { %618 = vmatprep.subr.bf16.mxu0 %v1724_v30  ;;  %659 = vmatprep.subr.bf16.mxu1 %v1737_v33 }
 0x21e   :  { %619 = vmatpush1.bf16.msra.mxu0 %v1744_v34  ;;  %660 = vmatpush1.bf16.msra.mxu1 %v1751_v35 }
 0x21f   :  { %731 = vmatprep.subr.bf16.mxu0 %v1553_v0  ;;  %772 = vmatprep.subr.bf16.mxu1 %v1566_v3 }
 0x2c1   :  { %v511_v45 = vpop.f32.mrf.mxu0  ;;  %v552_v60 = vpop.f32.mrf.mxu1 }
 0x2c2   :  { %v559_v62 = vadd.f32 %v1293_v40, %v511_v45  ;;  %v561_v46 = vadd.f32 %v1295_v38, %v552_v60 }
 0x2c3   :  { %v513_v63 = vpop.f32.mrf.mxu0  ;;  %v554_v29 = vpop.f32.mrf.mxu1 }
 0x2c4   :  { %v563_v32 = vmul.f32 0.5, %v559_v62  ;;  %v560_v36 = vadd.f32 %v1294_v61, %v513_v63  ;;  %v562_v48 = vadd.f32 %v1296_v47, %v554_v29 }
 0x2c5   :  { %v515_v39 = vpop.f32.mrf.mxu0  ;;  %v556_v41 = vpop.f32.mrf.mxu1 }
 0x2c6   :  { %1408 = vtanh.f32 %v563_v32  ;;  %v567_v42 = vmul.f32 0.5, %v560_v36  ;;  %v572_v49 = vmul.f32 0.5, %v562_v48  ;;  %v1300_v41 = vld [vmem:[%s2289_s1 + $0x68] sm:$0xff]  ;;  %v1301_v48 = vld [vmem:[%s2289_s1 + $0x70] sm:$0xff] }
 0x2c7   :  { %v516_v43 = vpop.f32.mrf.mxu0  ;;  %v557_v44 = vpop.f32.mrf.mxu1 }
 0x2c8   :  { %1410 = vtanh.f32 %v567_v42 }
 0x2c9   :  { %1412 = vtanh.f32 %v561_v46 }
 0x2ca   :  { %1414 = vtanh.f32 %v572_v49 }
 0x2d3   :  { %v1409_v50 = vpop.eup %1408 }
 0x2d4   :  { %v565_v51 = vmul.f32 0.5, %v1409_v50 }
 0x2d5   :  { %v1411_v52 = vpop.eup %1410 }
 0x2d6   :  { %v566_v54 = vadd.f32 0.5, %v565_v51  ;;  %v569_v55 = vmul.f32 0.5, %v1411_v52  ;;  %v1413_v58 = vpop.eup %1412 }
 0x2d7   :  { %v1415_v60 = vpop.eup %1414 }
 0x2d8   :  { %v570_v56 = vadd.f32 0.5, %v569_v55  ;;  %v577_v37 = vmul.f32 %v1413_v58, %v566_v54  ;;  %v574_v61 = vmul.f32 0.5, %v1415_v60 }
 0x2da   :  { %v576_v26 = vmul.f32 %v570_v56, %v1881_v53  ;;  %v575_v62 = vadd.f32 0.5, %v574_v61  ;;  %v1302_v56 = vld [vmem:[%s2289_s1 + $0x78] sm:$0xff] }
 0x2dc   :  { %v578_v40 = vadd.f32 %v577_v37, %v576_v26 }
 0x2de   :  { %1416 = vtanh.f32 %v578_v40  ;;  %v1939_v45 = vsel %vm588_vm11, %v578_v40, %v1881_v53  ;;  %v1299_v53 = vld [vmem:[%s2289_s1 + $0x60] sm:$0xff] }
 0x2eb   :  { %v1417_v63 = vpop.eup %1416 }
 0x2ec   :  { %v580_v29 = vmul.f32 %v1417_v63, %v575_v62 }
 0x2ee   :  { %v1942_v32 = vsel %vm588_vm11, %v580_v29, %v1884_v59  ;;  %v593_v36 = vsel %vm588_vm11, %v580_v29, 0.0 }
 0x2ef   :  { %1298 = vst [vmem:[%s2291_s3 + $0x10] sm:$0xff] %v593_v36  ;;  %v603_v38 = vpack.c.bf16 %v1942_v32, %v1942_v32 }
 0x2f1   :  { %637 = vmatmul.mubr.bf16.vlgmr.msra.gmra.mxu0 %v603_v38  ;;  %678 = vmatmul.mubr.bf16.vlgmr.msra.gmra.mxu1 %v603_v38  ;;  %v714_v38 = vpop.permute.xlu1 %713 }
 0x2f2   :  { %732 = vmatpush1.bf16.msra.mxu0 %v1558_v1  ;;  %773 = vmatpush1.bf16.msra.mxu1 %v1571_v4  ;;  %vm715_vm12 = vcmp.eq.s32.totalorder %v714_v38, 1 }
 0x2f3   :  { %733 = vmatprep.subr.bf16.mxu0 %v1578_v5  ;;  %774 = vmatprep.subr.bf16.mxu1 %v1590_v7 }
 0x2f4   :  { %763 = vmatprep.mubr.bf16.mxu0 %v1522_v2  ;;  %804 = vmatprep.mubr.bf16.mxu1 %v1522_v2 }
 0x2f6   :  { %734 = vmatpush1.bf16.msra.mxu0 %v1583_v6  ;;  %775 = vmatpush1.bf16.msra.mxu1 %v1597_v8 }
 0x2f7   :  { %735 = vmatprep.subr.bf16.mxu0 %v1603_v9  ;;  %776 = vmatprep.subr.bf16.mxu1 %v1614_v11 }
 0x2fa   :  { %736 = vmatpush1.bf16.msra.mxu0 %v1609_v10  ;;  %777 = vmatpush1.bf16.msra.mxu1 %v1626_v13 }
 0x2fb   :  { %737 = vmatprep.subr.bf16.mxu0 %v1620_v12  ;;  %778 = vmatprep.subr.bf16.mxu1 %v1632_v14 }
 0x2fe   :  { %738 = vmatpush1.bf16.msra.mxu0 %v1638_v15  ;;  %779 = vmatpush1.bf16.msra.mxu1 %v1650_v17 }
 0x2ff   :  { %739 = vmatprep.subr.bf16.mxu0 %v1644_v16  ;;  %780 = vmatprep.subr.bf16.mxu1 %v1656_v18 }
 0x302   :  { %740 = vmatpush1.bf16.msra.mxu0 %v1662_v19  ;;  %781 = vmatpush1.bf16.msra.mxu1 %v1674_v21 }
 0x303   :  { %741 = vmatprep.subr.bf16.mxu0 %v1668_v20  ;;  %782 = vmatprep.subr.bf16.mxu1 %v1680_v22 }
 0x306   :  { %742 = vmatpush1.bf16.msra.mxu0 %v1686_v23  ;;  %783 = vmatpush1.bf16.msra.mxu1 %v1698_v25 }
 0x307   :  { %743 = vmatprep.subr.bf16.mxu0 %v1692_v24  ;;  %784 = vmatprep.subr.bf16.mxu1 %v1709_v27 }
 0x30a   :  { %744 = vmatpush1.bf16.msra.mxu0 %v1717_v28  ;;  %785 = vmatpush1.bf16.msra.mxu1 %v1730_v31 }
 0x30b   :  { %745 = vmatprep.subr.bf16.mxu0 %v1724_v30  ;;  %786 = vmatprep.subr.bf16.mxu1 %v1737_v33 }
 0x30e   :  { %746 = vmatpush1.bf16.msra.mxu0 %v1744_v34  ;;  %787 = vmatpush1.bf16.msra.mxu1 %v1751_v35 }
 0x30f   :  { %858 = vmatprep.subr.bf16.mxu0 %v1553_v0  ;;  %899 = vmatprep.subr.bf16.mxu1 %v1566_v3 }
 0x3b1   :  { %v638_v59 = vpop.f32.mrf.mxu0  ;;  %v679_v39 = vpop.f32.mrf.mxu1 }
 0x3b2   :  { %v686_v42 = vadd.f32 %v1299_v53, %v638_v59  ;;  %v688_v55 = vadd.f32 %v1301_v48, %v679_v39 }
 0x3b3   :  { %v640_v43 = vpop.f32.mrf.mxu0  ;;  %v681_v44 = vpop.f32.mrf.mxu1 }
 0x3b4   :  { %v690_v46 = vmul.f32 0.5, %v686_v42  ;;  %v687_v47 = vadd.f32 %v1300_v41, %v640_v43  ;;  %v689_v57 = vadd.f32 %v1302_v56, %v681_v44 }
 0x3b5   :  { %v642_v49 = vpop.f32.mrf.mxu0  ;;  %v683_v50 = vpop.f32.mrf.mxu1 }
 0x3b6   :  { %1418 = vtanh.f32 %v690_v46  ;;  %v694_v51 = vmul.f32 0.5, %v687_v47  ;;  %v699_v58 = vmul.f32 0.5, %v689_v57  ;;  %v1308_v50 = vld [vmem:[%s2289_s1 + $0x98] sm:$0xff] }
 0x3b7   :  { %v643_v52 = vpop.f32.mrf.mxu0  ;;  %v684_v54 = vpop.f32.mrf.mxu1 }
 0x3b8   :  { %1420 = vtanh.f32 %v694_v51 }
 0x3b9   :  { %1422 = vtanh.f32 %v688_v55 }
 0x3ba   :  { %1424 = vtanh.f32 %v699_v58 }
 0x3c3   :  { %v1419_v26 = vpop.eup %1418 }
 0x3c4   :  { %v692_v37 = vmul.f32 0.5, %v1419_v26 }
 0x3c5   :  { %v1421_v40 = vpop.eup %1420 }
 0x3c6   :  { %v693_v60 = vadd.f32 0.5, %v692_v37  ;;  %v696_v61 = vmul.f32 0.5, %v1421_v40  ;;  %v1423_v63 = vpop.eup %1422 }
 0x3c7   :  { %v1425_v39 = vpop.eup %1424 }
 0x3c8   :  { %v697_v62 = vadd.f32 0.5, %v696_v61  ;;  %v704_v36 = vmul.f32 %v1423_v63, %v693_v60  ;;  %v701_v41 = vmul.f32 0.5, %v1425_v39  ;;  %v841_v61 = vpop.permute.xlu0 %840 }
 0x3c9   :  { %vm842_vm13 = vcmp.eq.s32.totalorder %v841_v61, 1  ;;  %v1481_v61 = vld [vmem:[%s2290_s2 + $0x8c] ss:$16 sps:$4 sm:$0xff]  }
 0x3ca   :  { %v703_v29 = vmul.f32 %v697_v62, %v1939_v45  ;;  %v702_v42 = vadd.f32 0.5, %v701_v41 }
 0x3cc   :  { %v705_v53 = vadd.f32 %v704_v36, %v703_v29 }
 0x3ce   :  { %1426 = vtanh.f32 %v705_v53  ;;  %v1997_v59 = vsel %vm715_vm12, %v705_v53, %v1939_v45 }
 0x3db   :  { %v1427_v43 = vpop.eup %1426 }
 0x3dc   :  { %v707_v44 = vmul.f32 %v1427_v43, %v702_v42 }
 0x3de   :  { %v720_v46 = vsel %vm715_vm12, %v707_v44, 0.0  ;;  %v2000_v47 = vsel %vm715_vm12, %v707_v44, %v1942_v32  ;;  %v2074_v44 = vld [vmem:[%s2290_s2 + $0xe8] ss:$16 sps:$4 sm:$0xff]  }
 0x3df   :  { %1304 = vst [vmem:[%s2291_s3 + $0x18] sm:$0xff] %v720_v46  ;;  %v730_v48 = vpack.c.bf16 %v2000_v47, %v2000_v47  ;;  %v2080_v46 = vld [vmem:[%s2290_s2 + $0xc4] ss:$16 sps:$4 sm:$0xff]  }
 0x3e1   :  { %764 = vmatmul.mubr.bf16.vlgmr.msra.gmra.mxu0 %v730_v48  ;;  %805 = vmatmul.mubr.bf16.vlgmr.msra.gmra.mxu1 %v730_v48  ;;  %v2094_v48 = vld [vmem:[%s2290_s2 + $0xc0] ss:$16 sps:$4 sm:$0xff]  }
 0x3e2   :  { %859 = vmatpush1.bf16.msra.mxu0 %v1558_v1  ;;  %900 = vmatpush1.bf16.msra.mxu1 %v1571_v4  ;;  %v1305_v1 = vld [vmem:[%s2289_s1 + $0x80] sm:$0xff] }
 0x3e3   :  { %860 = vmatprep.subr.bf16.mxu0 %v1578_v5  ;;  %901 = vmatprep.subr.bf16.mxu1 %v1590_v7 }
 0x3e4   :  { %890 = vmatprep.mubr.bf16.mxu0 %v1522_v2  ;;  %931 = vmatprep.mubr.bf16.mxu1 %v1522_v2 }
 0x3e6   :  { %861 = vmatpush1.bf16.msra.mxu0 %v1583_v6  ;;  %902 = vmatpush1.bf16.msra.mxu1 %v1597_v8  ;;  %v1306_v6 = vld [vmem:[%s2289_s1 + $0x88] sm:$0xff] }
 0x3e7   :  { %862 = vmatprep.subr.bf16.mxu0 %v1603_v9  ;;  %903 = vmatprep.subr.bf16.mxu1 %v1614_v11 }
 0x3ea   :  { %863 = vmatpush1.bf16.msra.mxu0 %v1609_v10  ;;  %904 = vmatpush1.bf16.msra.mxu1 %v1626_v13 }
 0x3eb   :  { %864 = vmatprep.subr.bf16.mxu0 %v1620_v12  ;;  %905 = vmatprep.subr.bf16.mxu1 %v1632_v14 }
 0x3ee   :  { %865 = vmatpush1.bf16.msra.mxu0 %v1638_v15  ;;  %906 = vmatpush1.bf16.msra.mxu1 %v1650_v17 }
 0x3ef   :  { %866 = vmatprep.subr.bf16.mxu0 %v1644_v16  ;;  %907 = vmatprep.subr.bf16.mxu1 %v1656_v18 }
 0x3f2   :  { %867 = vmatpush1.bf16.msra.mxu0 %v1662_v19  ;;  %908 = vmatpush1.bf16.msra.mxu1 %v1674_v21 }
 0x3f3   :  { %868 = vmatprep.subr.bf16.mxu0 %v1668_v20  ;;  %909 = vmatprep.subr.bf16.mxu1 %v1680_v22 }
 0x3f6   :  { %869 = vmatpush1.bf16.msra.mxu0 %v1686_v23  ;;  %910 = vmatpush1.bf16.msra.mxu1 %v1698_v25 }
 0x3f7   :  { %870 = vmatprep.subr.bf16.mxu0 %v1692_v24  ;;  %911 = vmatprep.subr.bf16.mxu1 %v1709_v27 }
 0x3fa   :  { %871 = vmatpush1.bf16.msra.mxu0 %v1717_v28  ;;  %912 = vmatpush1.bf16.msra.mxu1 %v1730_v31 }
 0x3fb   :  { %872 = vmatprep.subr.bf16.mxu0 %v1724_v30  ;;  %913 = vmatprep.subr.bf16.mxu1 %v1737_v33 }
 0x3fe   :  { %873 = vmatpush1.bf16.msra.mxu0 %v1744_v34  ;;  %914 = vmatpush1.bf16.msra.mxu1 %v1751_v35 }
 0x3ff   :  { %985 = vmatprep.subr.bf16.mxu0 %v1553_v0  ;;  %1026 = vmatprep.subr.bf16.mxu1 %v1566_v3  ;;  %v1307_v0 = vld [vmem:[%s2289_s1 + $0x90] sm:$0xff] }
 0x4a1   :  { %v765_v4 = vpop.f32.mrf.mxu0  ;;  %v806_v5 = vpop.f32.mrf.mxu1 }
 0x4a2   :  { %v813_v7 = vadd.f32 %v1305_v1, %v765_v4  ;;  %v815_v49 = vadd.f32 %v1307_v0, %v806_v5  ;;  %v2100_v1 = vld [vmem:[%s2290_s2 + $0xc8] ss:$16 sps:$4 sm:$0xff]   ;;  %v2106_v4 = vld [vmem:[%s2290_s2 + $0xa4] ss:$16 sps:$4 sm:$0xff]   ;;  %v2112_v5 = vld [vmem:[%s2290_s2 + $0xac] ss:$16 sps:$4 sm:$0xff]  }
 0x4a3   :  { %v767_v8 = vpop.f32.mrf.mxu0  ;;  %v808_v9 = vpop.f32.mrf.mxu1 }
 0x4a4   :  { %v817_v10 = vmul.f32 0.5, %v813_v7  ;;  %v814_v11 = vadd.f32 %v1306_v6, %v767_v8  ;;  %v816_v51 = vadd.f32 %v1308_v50, %v808_v9  ;;  %v2118_v6 = vld [vmem:[%s2290_s2 + $0xa0] ss:$16 sps:$4 sm:$0xff]   ;;  %v2124_v7 = vld [vmem:[%s2290_s2 + $0xa8] ss:$16 sps:$4 sm:$0xff]  }
 0x4a5   :  { %v769_v3 = vpop.f32.mrf.mxu0  ;;  %v810_v12 = vpop.f32.mrf.mxu1  ;;  %v2130_v8 = vld [vmem:[%s2290_s2 + $0x84] ss:$16 sps:$4 sm:$0xff]  }
 0x4a6   :  { %1428 = vtanh.f32 %v817_v10  ;;  %v821_v13 = vmul.f32 0.5, %v814_v11  ;;  %v826_v52 = vmul.f32 0.5, %v816_v51  ;;  %v968_v51 = vpop.permute.xlu1 %967 }
 0x4a7   :  { %v770_v45 = vpop.f32.mrf.mxu0  ;;  %v811_v32 = vpop.f32.mrf.mxu1  ;;  %vm969_vm14 = vcmp.eq.s32.totalorder %v968_v51, 1 }
 0x4a8   :  { %1430 = vtanh.f32 %v821_v13 }
 0x4a9   :  { %1432 = vtanh.f32 %v815_v49 }
 0x4aa   :  { %1434 = vtanh.f32 %v826_v52 }
 0x4b3   :  { %v1429_v54 = vpop.eup %1428 }
 0x4b4   :  { %v819_v55 = vmul.f32 0.5, %v1429_v54 }
 0x4b5   :  { %v1431_v56 = vpop.eup %1430 }
 0x4b6   :  { %v820_v57 = vadd.f32 0.5, %v819_v55  ;;  %v823_v58 = vmul.f32 0.5, %v1431_v56  ;;  %v1433_v37 = vpop.eup %1432 }
 0x4b7   :  { %v1435_v29 = vpop.eup %1434 }
 0x4b8   :  { %v824_v26 = vadd.f32 0.5, %v823_v58  ;;  %v831_v60 = vmul.f32 %v1433_v37, %v820_v57  ;;  %v828_v36 = vmul.f32 0.5, %v1435_v29  ;;  %v1485_v29 = vld [vmem:[%s2290_s2 + $0x6c] ss:$16 sps:$4 sm:$0xff]  }
 0x4ba   :  { %v830_v40 = vmul.f32 %v824_v26, %v1997_v59  ;;  %v829_v38 = vadd.f32 0.5, %v828_v36  ;;  %v1486_v36 = vld [vmem:[%s2290_s2 + $0x60] ss:$16 sps:$4 sm:$0xff]  }
 0x4bc   :  { %v832_v62 = vadd.f32 %v831_v60, %v830_v40 }
 0x4be   :  { %1436 = vtanh.f32 %v832_v62  ;;  %v2055_v63 = vsel %vm842_vm13, %v832_v62, %v1997_v59  ;;  %v2068_v59 = vld [vmem:[%s2290_s2 + $0xe0] ss:$16 sps:$4 sm:$0xff]   ;;  %v1483_v62 = vld [vmem:[%s2290_s2 + $0x88] ss:$16 sps:$4 sm:$0xff]  }
 0x4cb   :  { %v1437_v53 = vpop.eup %1436 }
 0x4cc   :  { %v834_v39 = vmul.f32 %v1437_v53, %v829_v38  ;;  %v1487_v38 = vld [vmem:[%s2290_s2 + $0x68] ss:$16 sps:$4 sm:$0xff]   ;;  %v1488_v53 = vld [vmem:[%s2290_s2 + $0x44] ss:$16 sps:$4 sm:$0xff]  }
 0x4ce   :  { %v847_v41 = vsel %vm842_vm13, %v834_v39, 0.0  ;;  %v2058_v42 = vsel %vm842_vm13, %v834_v39, %v2000_v47  ;;  %v2086_v47 = vld [vmem:[%s2290_s2 + $0xcc] ss:$16 sps:$4 sm:$0xff]  }
 0x4cf   :  { %1310 = vst [vmem:[%s2291_s3 + $0x20] sm:$0xff] %v847_v41  ;;  %v857_v43 = vpack.c.bf16 %v2058_v42, %v2058_v42  ;;  %v1489_v39 = vld [vmem:[%s2290_s2 + $0x4c] ss:$16 sps:$4 sm:$0xff]   ;;  %v1490_v41 = vld [vmem:[%s2290_s2 + $0x40] ss:$16 sps:$4 sm:$0xff]  }
 0x4d1   :  { %891 = vmatmul.mubr.bf16.vlgmr.msra.gmra.mxu0 %v857_v43  ;;  %932 = vmatmul.mubr.bf16.vlgmr.msra.gmra.mxu1 %v857_v43  ;;  %v1492_v43 = vld [vmem:[%s2290_s2 + $0x24] ss:$16 sps:$4 sm:$0xff]  }
 0x4d2   :  { %986 = vmatpush1.bf16.msra.mxu0 %v2068_v59  ;;  %1027 = vmatpush1.bf16.msra.mxu1 %v2074_v44 }
 0x4d3   :  { %987 = vmatprep.subr.bf16.mxu0 %v2080_v46  ;;  %1028 = vmatprep.subr.bf16.mxu1 %v2086_v47 }
 0x4d4   :  { %1017 = vmatprep.mubr.bf16.mxu0 %v1522_v2  ;;  %1058 = vmatprep.mubr.bf16.mxu1 %v1522_v2 }
 0x4d6   :  { %988 = vmatpush1.bf16.msra.mxu0 %v2094_v48  ;;  %1029 = vmatpush1.bf16.msra.mxu1 %v2100_v1 }
 0x4d7   :  { %989 = vmatprep.subr.bf16.mxu0 %v2106_v4  ;;  %1030 = vmatprep.subr.bf16.mxu1 %v2112_v5 }
 0x4da   :  { %990 = vmatpush1.bf16.msra.mxu0 %v2118_v6  ;;  %1031 = vmatpush1.bf16.msra.mxu1 %v2124_v7 }
 0x4db   :  { %991 = vmatprep.subr.bf16.mxu0 %v2130_v8  ;;  %1032 = vmatprep.subr.bf16.mxu1 %v1632_v14  ;;  %v1479_v14 = vld [vmem:[%s2290_s2 + $0xe4] ss:$16 sps:$4 sm:$0xff]  }
 0x4de   :  { %992 = vmatpush1.bf16.msra.mxu0 %v1638_v15  ;;  %1033 = vmatpush1.bf16.msra.mxu1 %v1650_v17  ;;  %v1480_v15 = vld [vmem:[%s2290_s2 + $0xec] ss:$16 sps:$4 sm:$0xff]  }
 0x4df   :  { %993 = vmatprep.subr.bf16.mxu0 %v1644_v16  ;;  %1034 = vmatprep.subr.bf16.mxu1 %v1656_v18  ;;  %v1311_v16 = vld [vmem:[%s2289_s1 + $0xa0] sm:$0xff] }
 0x4e2   :  { %994 = vmatpush1.bf16.msra.mxu0 %v1662_v19  ;;  %1035 = vmatpush1.bf16.msra.mxu1 %v1674_v21  ;;  %v1312_v19 = vld [vmem:[%s2289_s1 + $0xa8] sm:$0xff] }
 0x4e3   :  { %995 = vmatprep.subr.bf16.mxu0 %v1668_v20  ;;  %1036 = vmatprep.subr.bf16.mxu1 %v1680_v22 }
 0x4e6   :  { %996 = vmatpush1.bf16.msra.mxu0 %v1686_v23  ;;  %1037 = vmatpush1.bf16.msra.mxu1 %v1698_v25  ;;  %v1313_v25 = vld [vmem:[%s2289_s1 + $0xb0] sm:$0xff] }
 0x4e7   :  { %997 = vmatprep.subr.bf16.mxu0 %v1692_v24  ;;  %1038 = vmatprep.subr.bf16.mxu1 %v1709_v27 }
 0x4ea   :  { %998 = vmatpush1.bf16.msra.mxu0 %v1717_v28  ;;  %1039 = vmatpush1.bf16.msra.mxu1 %v1730_v31 }
 0x4eb   :  { %999 = vmatprep.subr.bf16.mxu0 %v1724_v30  ;;  %1040 = vmatprep.subr.bf16.mxu1 %v1737_v33 }
 0x4ee   :  { %1000 = vmatpush1.bf16.msra.mxu0 %v1744_v34  ;;  %1041 = vmatpush1.bf16.msra.mxu1 %v1751_v35  ;;  %v1314_v35 = vld [vmem:[%s2289_s1 + $0xb8] sm:$0xff] }
 0x4ef   :  { %1112 = vmatprep.subr.bf16.mxu0 %v1479_v14  ;;  %1153 = vmatprep.subr.bf16.mxu1 %v1480_v15 }
 0x591   :  { %v892_v17 = vpop.f32.mrf.mxu0  ;;  %v933_v18 = vpop.f32.mrf.mxu1 }
 0x592   :  { %v940_v20 = vadd.f32 %v1311_v16, %v892_v17  ;;  %v942_v34 = vadd.f32 %v1313_v25, %v933_v18 }
 0x593   :  { %v894_v21 = vpop.f32.mrf.mxu0  ;;  %v935_v22 = vpop.f32.mrf.mxu1 }
 0x594   :  { %v944_v23 = vmul.f32 0.5, %v940_v20  ;;  %v941_v24 = vadd.f32 %v1312_v19, %v894_v21  ;;  %v943_v9 = vadd.f32 %v1314_v35, %v935_v22  ;;  %v1319_v19 = vld [vmem:[%s2289_s1 + $0xd0] sm:$0xff] }
 0x595   :  { %v896_v27 = vpop.f32.mrf.mxu0  ;;  %v937_v28 = vpop.f32.mrf.mxu1 }
 0x596   :  { %1438 = vtanh.f32 %v944_v23  ;;  %v948_v30 = vmul.f32 0.5, %v941_v24  ;;  %v953_v10 = vmul.f32 0.5, %v943_v9  ;;  %v1320_v27 = vld [vmem:[%s2289_s1 + $0xd8] sm:$0xff] }
 0x597   :  { %v897_v31 = vpop.f32.mrf.mxu0  ;;  %v938_v33 = vpop.f32.mrf.mxu1 }
 0x598   :  { %1440 = vtanh.f32 %v948_v30 }
 0x599   :  { %1442 = vtanh.f32 %v942_v34 }
 0x59a   :  { %1444 = vtanh.f32 %v953_v10 }
 0x5a3   :  { %v1439_v11 = vpop.eup %1438 }
 0x5a4   :  { %v946_v0 = vmul.f32 0.5, %v1439_v11 }
 0x5a5   :  { %v1441_v3 = vpop.eup %1440 }
 0x5a6   :  { %v947_v12 = vadd.f32 0.5, %v946_v0  ;;  %v950_v13 = vmul.f32 0.5, %v1441_v3  ;;  %v1443_v32 = vpop.eup %1442  ;;  %v1095_v0 = vpop.permute.xlu0 %1094 }
 0x5a7   :  { %v1445_v55 = vpop.eup %1444  ;;  %vm1096_vm15 = vcmp.eq.s32.totalorder %v1095_v0, 1 }
 0x5a8   :  { %v951_v45 = vadd.f32 0.5, %v950_v13  ;;  %v958_v50 = vmul.f32 %v1443_v32, %v947_v12  ;;  %v955_v56 = vmul.f32 0.5, %v1445_v55 }
 0x5aa   :  { %v957_v49 = vmul.f32 %v951_v45, %v2055_v63  ;;  %v956_v57 = vadd.f32 0.5, %v955_v56 }
 0x5ac   :  { %v959_v52 = vadd.f32 %v958_v50, %v957_v49 }
 0x5ae   :  { %1446 = vtanh.f32 %v959_v52  ;;  %v2172_v54 = vsel %vm969_vm14, %v959_v52, %v2055_v63  ;;  %v1484_v63 = vld [vmem:[%s2290_s2 + $0x64] ss:$16 sps:$4 sm:$0xff]  }
 0x5bb   :  { %v1447_v58 = vpop.eup %1446 }
 0x5bc   :  { %v961_v26 = vmul.f32 %v1447_v58, %v956_v57  ;;  %v1323_v58 = vld [vmem:[%s2289_s1 + $0xe0] sm:$0xff] }
 0x5be   :  { %v974_v37 = vsel %vm969_vm14, %v961_v26, 0.0  ;;  %v2175_v40 = vsel %vm969_vm14, %v961_v26, %v2058_v42  ;;  %v1491_v42 = vld [vmem:[%s2290_s2 + $0x48] ss:$16 sps:$4 sm:$0xff]  }
 0x5bf   :  { %1316 = vst [vmem:[%s2291_s3 + $0x28] sm:$0xff] %v974_v37  ;;  %v984_v60 = vpack.c.bf16 %v2175_v40, %v2175_v40  ;;  %v1324_v37 = vld [vmem:[%s2289_s1 + $0xe8] sm:$0xff] }
 0x5c1   :  { %1018 = vmatmul.mubr.bf16.vlgmr.msra.gmra.mxu0 %v984_v60  ;;  %1059 = vmatmul.mubr.bf16.vlgmr.msra.gmra.mxu1 %v984_v60 }
 0x5c2   :  { %1113 = vmatpush1.bf16.msra.mxu0 %v2068_v59  ;;  %1154 = vmatpush1.bf16.msra.mxu1 %v2074_v44  ;;  %v1493_v59 = vld [vmem:[%s2290_s2 + $0x2c] ss:$16 sps:$4 sm:$0xff]   ;;  %v1494_v44 = vld [vmem:[%s2290_s2 + $0x20] ss:$16 sps:$4 sm:$0xff]  }
 0x5c3   :  { %1114 = vmatprep.subr.bf16.mxu0 %v2080_v46  ;;  %1155 = vmatprep.subr.bf16.mxu1 %v2086_v47  ;;  %v1495_v46 = vld [vmem:[%s2290_s2 + $0x28] ss:$16 sps:$4 sm:$0xff]   ;;  %v1496_v47 = vld [vmem:[%s2290_s2 + $0x4] ss:$16 sps:$4 sm:$0xff]  }
 0x5c4   :  { %1144 = vmatprep.mubr.bf16.mxu0 %v1522_v2  ;;  %1185 = vmatprep.mubr.bf16.mxu1 %v1522_v2  ;;  %v1482_v2 = vld [vmem:[%s2290_s2 + $0x80] ss:$16 sps:$4 sm:$0xff]  }
 0x5c6   :  { %1115 = vmatpush1.bf16.msra.mxu0 %v2094_v48  ;;  %1156 = vmatpush1.bf16.msra.mxu1 %v2100_v1  ;;  %v1497_v48 = vld [vmem:[%s2290_s2 + $0xc] ss:$16 sps:$4 sm:$0xff]   ;;  %v1498_v1 = vld [vmem:[%s2290_s2] ss:$16 sps:$4 sm:$0xff]  }
 0x5c7   :  { %1116 = vmatprep.subr.bf16.mxu0 %v2106_v4  ;;  %1157 = vmatprep.subr.bf16.mxu1 %v2112_v5  ;;  %v1499_v4 = vld [vmem:[%s2290_s2 + $0x8] ss:$16 sps:$4 sm:$0xff]   ;;  %v1317_v5 = vld [vmem:[%s2289_s1 + $0xc0] sm:$0xff] }
 0x5ca   :  { %1117 = vmatpush1.bf16.msra.mxu0 %v2118_v6  ;;  %1158 = vmatpush1.bf16.msra.mxu1 %v2124_v7 }
 0x5cb   :  { %1118 = vmatprep.subr.bf16.mxu0 %v2130_v8  ;;  %1159 = vmatprep.subr.bf16.mxu1 %v1481_v61  ;;  %v1318_v8 = vld [vmem:[%s2289_s1 + $0xc8] sm:$0xff] }
 0x5ce   :  { %1119 = vmatpush1.bf16.msra.mxu0 %v1482_v2  ;;  %1160 = vmatpush1.bf16.msra.mxu1 %v1483_v62 }
 0x5cf   :  { %1120 = vmatprep.subr.bf16.mxu0 %v1484_v63  ;;  %1161 = vmatprep.subr.bf16.mxu1 %v1485_v29  ;;  %v1325_v63 = vld [vmem:[%s2289_s1 + $0xf0] sm:$0xff] }
 0x5d2   :  { %1121 = vmatpush1.bf16.msra.mxu0 %v1486_v36  ;;  %1162 = vmatpush1.bf16.msra.mxu1 %v1487_v38 }
 0x5d3   :  { %1122 = vmatprep.subr.bf16.mxu0 %v1488_v53  ;;  %1163 = vmatprep.subr.bf16.mxu1 %v1489_v39 }
 0x5d6   :  { %1123 = vmatpush1.bf16.msra.mxu0 %v1490_v41  ;;  %1164 = vmatpush1.bf16.msra.mxu1 %v1491_v42  ;;  %v1326_v42 = vld [vmem:[%s2289_s1 + $0xf8] sm:$0xff]  ;;  %s1524_s1 = smov [#allocation4]  }
 0x5d7   :  { %1124 = vmatprep.subr.bf16.mxu0 %v1492_v43  ;;  %1165 = vmatprep.subr.bf16.mxu1 %v1493_v59  ;;  %s1244_s8 = sshll.u32 %s1524_s1, 4  ;;  %s1245_s8 = int_to_ptr.vmem [resolvable:$true] %s1244_s8 }
 0x5d8   :  { %s1500_s11 = scalar_lea.vmem %s1245_s8, 128  ;;  %p1505_p1 = scmp.lt.s32.totalorder %s1245_s8, %s1245_s8 }
 0x5d9   :  { %p1501_p0 = scmp.ne.s32.totalorder %s1245_s8, %s1500_s11  ;;  %p1506_p2 = scmp.lt.s32.totalorder %s1500_s11, %s1500_s11 }
 0x5da   :  { %1125 = vmatpush1.bf16.msra.mxu0 %v1494_v44  ;;  %1166 = vmatpush1.bf16.msra.mxu1 %v1495_v46 }
 0x5db   :  { %1126 = vmatprep.subr.bf16.mxu0 %v1496_v47  ;;  %1167 = vmatprep.subr.bf16.mxu1 %v1497_v48  ;;  %p1507_p3 = por %p1506_p2, %p1505_p1 }
 0x5dd   :  { %p1508_p4 = pnand %p1507_p3, %p1501_p0 }
 0x5de   :  { %1127 = vmatpush1.bf16.msra.mxu0 %v1498_v1  ;;  %1168 = vmatpush1.bf16.msra.mxu1 %v1499_v4 }
 0x681   :  { %v1019_v6 = vpop.f32.mrf.mxu0  ;;  %v1060_v7 = vpop.f32.mrf.mxu1 }
 0x682   :  { %v1067_v14 = vadd.f32 %v1317_v5, %v1019_v6  ;;  %v1069_v25 = vadd.f32 %v1319_v19, %v1060_v7 }
 0x683   :  { %v1021_v15 = vpop.f32.mrf.mxu0  ;;  %v1062_v16 = vpop.f32.mrf.mxu1 }
 0x684   :  { %v1071_v17 = vmul.f32 0.5, %v1067_v14  ;;  %v1068_v18 = vadd.f32 %v1318_v8, %v1021_v15  ;;  %v1070_v28 = vadd.f32 %v1320_v27, %v1062_v16  ;;  %v1222_v16 = vpop.permute.xlu1 %1221 }
 0x685   :  { %v1023_v20 = vpop.f32.mrf.mxu0  ;;  %v1064_v21 = vpop.f32.mrf.mxu1  ;;  %vm1223_vm0 = vcmp.eq.s32.totalorder %v1222_v16, 1 }
 0x686   :  { %1448 = vtanh.f32 %v1071_v17  ;;  %v1075_v22 = vmul.f32 0.5, %v1068_v18  ;;  %v1080_v30 = vmul.f32 0.5, %v1070_v28 }
 0x687   :  { %v1024_v23 = vpop.f32.mrf.mxu0  ;;  %v1065_v24 = vpop.f32.mrf.mxu1 }
 0x688   :  { %1450 = vtanh.f32 %v1075_v22 }
 0x689   :  { %1452 = vtanh.f32 %v1069_v25 }
 0x68a   :  { %1454 = vtanh.f32 %v1080_v30 }
 0x693   :  { %v1449_v31 = vpop.eup %1448 }
 0x694   :  { %v1073_v33 = vmul.f32 0.5, %v1449_v31 }
 0x695   :  { %v1451_v34 = vpop.eup %1450 }
 0x696   :  { %v1074_v35 = vadd.f32 0.5, %v1073_v33  ;;  %v1077_v9 = vmul.f32 0.5, %v1451_v34  ;;  %v1453_v11 = vpop.eup %1452 }
 0x697   :  { %v1455_v32 = vpop.eup %1454 }
 0x698   :  { %v1078_v10 = vadd.f32 0.5, %v1077_v9  ;;  %v1085_v12 = vmul.f32 %v1453_v11, %v1074_v35  ;;  %v1082_v49 = vmul.f32 0.5, %v1455_v32 }
 0x69a   :  { %v1084_v3 = vmul.f32 %v1078_v10, %v2172_v54  ;;  %v1083_v50 = vadd.f32 0.5, %v1082_v49 }
 0x69c   :  { %v1086_v13 = vadd.f32 %v1085_v12, %v1084_v3 }
 0x69e   :  { %1456 = vtanh.f32 %v1086_v13  ;;  %v1099_v45 = vsel %vm1096_vm15, %v1086_v13, %v2172_v54 }
 0x6ab   :  { %v1457_v51 = vpop.eup %1456 }
 0x6ac   :  { %v1088_v52 = vmul.f32 %v1457_v51, %v1083_v50 }
 0x6ae   :  { %v1101_v55 = vsel %vm1096_vm15, %v1088_v52, 0.0  ;;  %v1097_v56 = vsel %vm1096_vm15, %v1088_v52, %v2175_v40 }
 0x6af   :  { %1322 = vst [vmem:[%s2291_s3 + $0x30] sm:$0xff] %v1101_v55  ;;  %v1111_v57 = vpack.c.bf16 %v1097_v56, %v1097_v56 }
 0x6b1   :  { %1145 = vmatmul.mubr.bf16.vlgmr.msra.gmra.mxu0 %v1111_v57  ;;  %1186 = vmatmul.mubr.bf16.vlgmr.msra.gmra.mxu1 %v1111_v57 }
 0x771   :  { %v1146_v54 = vpop.f32.mrf.mxu0  ;;  %v1187_v26 = vpop.f32.mrf.mxu1 }
 0x772   :  { %v1194_v60 = vadd.f32 %v1323_v58, %v1146_v54  ;;  %v1196_v41 = vadd.f32 %v1325_v63, %v1187_v26 }
 0x773   :  { %v1148_v61 = vpop.f32.mrf.mxu0  ;;  %v1189_v40 = vpop.f32.mrf.mxu1 }
 0x774   :  { %v1198_v2 = vmul.f32 0.5, %v1194_v60  ;;  %v1195_v62 = vadd.f32 %v1324_v37, %v1148_v61  ;;  %v1197_v43 = vadd.f32 %v1326_v42, %v1189_v40 }
 0x775   :  { %v1150_v29 = vpop.f32.mrf.mxu0  ;;  %v1191_v36 = vpop.f32.mrf.mxu1 }
 0x776   :  { %1458 = vtanh.f32 %v1198_v2  ;;  %v1202_v38 = vmul.f32 0.5, %v1195_v62  ;;  %v1207_v59 = vmul.f32 0.5, %v1197_v43 }
 0x777   :  { %v1151_v53 = vpop.f32.mrf.mxu0  ;;  %v1192_v39 = vpop.f32.mrf.mxu1 }
 0x778   :  { %1460 = vtanh.f32 %v1202_v38 }
 0x779   :  { %1462 = vtanh.f32 %v1196_v41 }
 0x77a   :  { %1464 = vtanh.f32 %v1207_v59 }
 0x783   :  { %v1459_v44 = vpop.eup %1458 }
 0x784   :  { %v1200_v46 = vmul.f32 0.5, %v1459_v44 }
 0x785   :  { %v1461_v47 = vpop.eup %1460 }
 0x786   :  { %v1201_v48 = vadd.f32 0.5, %v1200_v46  ;;  %v1204_v1 = vmul.f32 0.5, %v1461_v47  ;;  %v1463_v5 = vpop.eup %1462 }
 0x787   :  { %v1465_v14 = vpop.eup %1464 }
 0x788   :  { %v1205_v4 = vadd.f32 0.5, %v1204_v1  ;;  %v1212_v7 = vmul.f32 %v1463_v5, %v1201_v48  ;;  %v1209_v15 = vmul.f32 0.5, %v1465_v14 }
 0x78a   :  { %v1211_v6 = vmul.f32 %v1205_v4, %v1099_v45  ;;  %v1210_v17 = vadd.f32 0.5, %v1209_v15 }
 0x78c   :  { %v1213_v8 = vadd.f32 %v1212_v7, %v1211_v6 }
 0x78e   :  { %1466 = vtanh.f32 %v1213_v8 }
 0x79b   :  { %v1467_v18 = vpop.eup %1466 }
 0x79c   :  { %v1215_v19 = vmul.f32 %v1467_v18, %v1210_v17 }
 0x79e   :  { %v1224_v20 = vsel %vm1223_vm0, %v1215_v19, %v1097_v56  ;;  %v1228_v21 = vsel %vm1223_vm0, %v1215_v19, 0.0 }
 0x79f   :  { %1328 = vst [vmem:[%s2291_s3 + $0x38] sm:$0xff] %v1228_v21  ;;  %1235 = vst [vmem:[#allocation4] sm:$0xff] %v1224_v20 }
 0x7a0   :  { %1511 = shalt.err (!%p1508_p4)
}
 0x7a1   :  { %1247 = dma.vmem_to_hbm [thread:$0]  %s1245_s8, 128, %s2292_s4, [#allocation5]  }
 0x7a2   :  { %1520 = dma.done.wait [#allocation5], 128  }
 0x7a3   :  { %1521 = vsyncadd [#allocation5], 4294967168 }
 0x7a4   :  { %1253 = vsyncpa [#allocation5], 1 }

</bundles_post_ra>
